<compile_context>
chip_gen: v7x
topology: tpu7x:2x2x1
jax: 0.10.0
libtpu: 0.0.40
codegen_flags: <defaults>
</compile_context>

<pallas_src>
import functools
import math

import numpy as np
import jax
import jax.numpy as jnp
from jax import lax
from jax.experimental import pallas as pl
from jax.experimental.pallas import tpu as pltpu


def _default_bf16_sidework():
    """bf16 VPU/EUP side-work only on chips that have it (v6e / v7x)."""
    try:
        kind = jax.devices()[0].device_kind.lower()
    except Exception:
        return False
    return ("v6" in kind) or ("v7" in kind)


def _attention_kernel(x_ref, w_ref, b_ref, mask_ref, o_ref, *,
                      num_heads, seq_len, bf16_sidework):
    # x_ref: (Bb*N, C) f32 ; w_ref: (C, 2C) bf16 ; b_ref: (1, 2C) f32
    # mask_ref: (H2*N, C/2) bf16 block-diagonal head mask ; o_ref: (Bb*N, C)
    BN, C = x_ref.shape
    N = seq_len
    Bb = BN // N
    H2 = num_heads // 2          # heads per branch
    half = C // 2

    x = x_ref[...]                                               # (Bb*N, C) f32

    # ---- fused projection: columns = [ q1*scale | k1 | v1 | ctx2(=v2) ] ----
    proj = jnp.dot(x.astype(jnp.bfloat16), w_ref[...],
                   preferred_element_type=jnp.float32) + b_ref[...]   # (Bb*N, 2C) f32

    # 1x1-window branch: context2 == v2.  Store that half of the output (with
    # its residual) directly -- no concatenates at the end of the kernel.
    o_ref[:, half:] = proj[:, 3 * half:] + x[:, half:]

    # Precomputed block-diagonal head mask (built once in the wrapper, bf16).
    # Row r of the tiled K/V corresponds to (head h = r // N, position m = r % N);
    # column c of a C/2-wide slab belongs to head c // D.
    mask_bf16 = mask_ref[...]                                    # (H2*N, half) bf16
    # v5e has no bf16 VPU: mask K/V in f32 there (single cast per grid step).
    mask_kv = mask_bf16 if bf16_sidework else mask_bf16.astype(jnp.float32)

    for b in range(Bb):          # static loop; wrapper caps Bb at <= 8
        rows = proj[b * N:(b + 1) * N]                 # (N, 2C), static row slice
        q = rows[:, :half].astype(jnp.bfloat16)        # pre-scaled q1
        k = rows[:, half:2 * half]                     # f32
        v = rows[:, 2 * half:3 * half]                 # f32
        if bf16_sidework:                              # v6e/v7x: bf16 VALUs
            k = k.astype(jnp.bfloat16)
            v = v.astype(jnp.bfloat16)

        # Block-diagonal K/V: row h*N+m holds k_h[m]/v_h[m] in head-h columns.
        kt = jnp.tile(k, (H2, 1)) * mask_kv            # (H2*N, half)
        vt = jnp.tile(v, (H2, 1)) * mask_kv            # (H2*N, half)
        if not bf16_sidework:
            kt = kt.astype(jnp.bfloat16)
            vt = vt.astype(jnp.bfloat16)

        # scores[n, h*N + m] = scale * q_h[n] . k_h[m]   (scale folded into q)
        s = lax.dot_general(q, kt, (((1,), (1,)), ((), ())),
                            preferred_element_type=jnp.float32)   # (N, H2*N)

        # A per-row global max is a valid stabilizer for every head's softmax
        # (it cancels in the per-head normalization below).
        m = jnp.max(s, axis=-1, keepdims=True)
        if bf16_sidework:                              # bf16 EUP on v6e/v7x
            p = jnp.exp((s - m).astype(jnp.bfloat16))
        else:
            p = jnp.exp(s - m).astype(jnp.bfloat16)    # (N, H2*N) bf16

        # One matmul yields both the unnormalized per-head context and the
        # per-head softmax denominator (precomputed bf16 mask columns appended
        # to the RHS -- no per-iteration casts of the mask).
        rhs = jnp.concatenate([vt, mask_bf16], axis=-1)            # (H2*N, C) bf16
        cv = jnp.dot(p, rhs, preferred_element_type=jnp.float32)   # (N, C)

        den = jnp.maximum(cv[:, half:], 1e-30)          # cheap NaN insurance
        ctx = cv[:, :half] * pl.reciprocal(den, approx=True)       # (N, half)

        # Direct slab store with the residual for this half -- no concat, no
        # list of live ctx blocks across the loop.
        o_ref[b * N:(b + 1) * N, :half] = ctx + x[b * N:(b + 1) * N, :half]


def attention_forward(x, params, num_heads, *, batch_block=None, bf16_sidework=None):
    """Pallas forward.

    batch_block: batch elements folded into one grid step.  Default = largest
    divisor of B that is <= 8 (bounds the in-kernel static loop).  Keep a
    single grid step on v5e/v6e; on v7x only split (batch_block = B // 2) when
    the per-core M dim (batch_block*N) reaches ~256 rows, otherwise the 2-TC
    split just adds pipeline overhead and duplicate weight fetches.
    """
    wq1, bq1, wkv1, bkv1, _wq2, _bq2, wkv2, bkv2 = params
    B, N, C = x.shape
    half = C // 2
    H2 = num_heads // 2
    D = C // num_heads
    scale = 1.0 / math.sqrt(half)                      # hidden_size = C // 2

    if bf16_sidework is None:
        bf16_sidework = _default_bf16_sidework()

    # Fused projection: [ q1*scale | k1 | v1 | v2 ].  q2 and the k2 half of kv2
    # cancel exactly (1x1 windows) and are dropped -> half the kv2 FLOPs/DMA.
    w_fused = jnp.concatenate([wq1 * scale, wkv1, wkv2[:, half:]],
                              axis=1).astype(jnp.bfloat16)             # (C, 2C) bf16
    b_fused = jnp.concatenate([bq1 * scale, bkv1, bkv2[half:]],
                              axis=0).reshape(1, 2 * C).astype(jnp.float32)

    # Block-diagonal head mask, built once on the host (compile-time constant).
    r_id = np.arange(H2 * N)[:, None]
    c_id = np.arange(half)[None, :]
    head_mask = jnp.asarray(((r_id // N) == (c_id // D)),
                            dtype=jnp.bfloat16)                        # (H2*N, half)

    if batch_block is None:
        # Largest divisor of B that keeps the unrolled in-kernel loop <= 8.
        batch_block = max(d for d in range(1, min(B, 8) + 1) if B % d == 0)
    assert B % batch_block == 0
    assert batch_block <= 8, (
        "batch_block > 8 would unroll a large static loop in-kernel; "
        "use more grid steps instead")
    grid_b = B // batch_block
    x2 = x.reshape(B * N, C)                           # flatten batch into matmul M-dim

    # Advisory cost estimate (block-diagonal layout contracts over H2*N).
    ce = pl.CostEstimate(
        flops=(2 * B * N * C * (2 * C)                 # fused projection
               + 2 * B * H2 * N * N * half             # scores matmul
               + 2 * B * H2 * N * N * C),              # context (+denominator) matmul
        transcendentals=B * H2 * N * N + B * N * half,
        bytes_accessed=(x2.size * 4 + w_fused.size * 2 + b_fused.size * 4
                        + head_mask.size * 2 + B * N * C * 4),
    )

    # Per-grid-step VMEM budget (double-buffered x/out blocks + constants +
    # proj/score temporaries).  Only raise the scoped limit when needed, and
    # stay well under v7x's 64 MiB physical VMEM.
    block_bytes = (2 * 2 * 4 * batch_block * N * C                   # x + out, 2x buffered, f32
                   + 2 * (2 * C * 2 * C + 4 * 2 * C + 2 * H2 * N * half)  # w/bias/mask, 2x buffered
                   + 4 * batch_block * N * 2 * C                     # proj (f32)
                   + 6 * N * H2 * N                                  # s (f32) + p (bf16)
                   + 3 * 2 * H2 * N * half + 2 * H2 * N * C)         # kt/vt/rhs tiles
    vmem_limit = None
    if block_bytes > (32 << 20):
        vmem_limit = min(int(block_bytes * 1.25), 60 << 20)

    kernel = functools.partial(_attention_kernel, num_heads=num_heads,
                               seq_len=N, bf16_sidework=bf16_sidework)
    out = pl.pallas_call(
        kernel,
        out_shape=jax.ShapeDtypeStruct((B * N, C), jnp.float32),
        grid_spec=pltpu.PrefetchScalarGridSpec(
            num_scalar_prefetch=0,
            grid=(grid_b,),
            in_specs=[
                pl.BlockSpec((batch_block * N, C), lambda g: (g, 0)),   # x (flattened)
                pl.BlockSpec((C, 2 * C), lambda g: (0, 0)),             # fused W (bf16)
                pl.BlockSpec((1, 2 * C), lambda g: (0, 0)),             # fused bias
                pl.BlockSpec((H2 * N, half), lambda g: (0, 0)),         # head mask (bf16)
            ],
            out_specs=pl.BlockSpec((batch_block * N, C), lambda g: (g, 0)),
        ),
        compiler_params=pltpu.CompilerParams(
            dimension_semantics=("parallel",),
            vmem_limit_bytes=vmem_limit),
        cost_estimate=ce,
    )(x2, w_fused, b_fused, head_mask)
    # TODO(synk): if C stays 64 at production batch, consider a lane-dense
    # (B*N//2, 2C) out_shape to avoid masked half-vreg stores (measure first).
    return out.reshape(B, N, C)


def attention_reference(x, params, num_heads):
    """Pure-JAX (f32) transcription of the PyTorch forward, for validation."""
    wq1, bq1, wkv1, bkv1, _wq2, _bq2, wkv2, bkv2 = params
    B, N, C = x.shape
    H2 = num_heads // 2
    D = C // num_heads
    hidden = C // 2
    q1 = (x @ wq1 + bq1).reshape(B, N, H2, D).transpose(0, 2, 1, 3)
    kv1 = (x @ wkv1 + bkv1).reshape(B, N, 2, H2, D).transpose(2, 0, 3, 1, 4)
    k1, v1 = kv1[0], kv1[1]
    s1 = jnp.einsum('bhnd,bhmd->bhnm', q1, k1) / math.sqrt(hidden)
    a1 = jax.nn.softmax(s1, axis=-1)
    c1 = jnp.einsum('bhnm,bhmd->bhnd', a1, v1).transpose(0, 2, 1, 3).reshape(B, N, -1)
    # 1x1-window branch: softmax over a single element == 1 -> context2 == v2
    kv2 = (x @ wkv2 + bkv2).reshape(B, N, 2, H2, D).transpose(2, 0, 3, 1, 4)
    v2 = kv2[1]
    c2 = v2.transpose(0, 2, 1, 3).reshape(B, N, -1)
    return jnp.concatenate([c1, c2], axis=-1) + x


if __name__ == "__main__":
    # input_dim=C=64, head_num=8 -> hidden_size=32, 4 heads per branch, head_dim=8
    B, N, C, num_heads = 2, 64, 64, 8   # N = 8*8 (perfect square, window path)
    key = jax.random.PRNGKey(0)
    keys = jax.random.split(key, 9)
    w_scale = 1.0 / math.sqrt(C)
    wq1 = jax.random.normal(keys[0], (C, C // 2), jnp.float32) * w_scale
    bq1 = jax.random.normal(keys[1], (C // 2,), jnp.float32) * w_scale
    wkv1 = jax.random.normal(keys[2], (C, C), jnp.float32) * w_scale
    bkv1 = jax.random.normal(keys[3], (C,), jnp.float32) * w_scale
    wq2 = jax.random.normal(keys[4], (C, C // 2), jnp.float32) * w_scale  # cancels (1x1 windows)
    bq2 = jax.random.normal(keys[5], (C // 2,), jnp.float32) * w_scale
    wkv2 = jax.random.normal(keys[6], (C, C), jnp.float32) * w_scale
    bkv2 = jax.random.normal(keys[7], (C,), jnp.float32) * w_scale
    x = jax.random.normal(keys[8], (B, N, C), jnp.float32)
    params = (wq1, bq1, wkv1, bkv1, wq2, bq2, wkv2, bkv2)

    ref = attention_reference(x, params, num_heads)

    # Default: whole batch folded into a single grid step (best at this size on
    # every generation; batch_block is capped at 8 for larger B).
    out = attention_forward(x, params, num_heads)
    jax.block_until_ready(out)
    assert out.shape == (B, N, C)
    # Tolerance accounts for bf16 MXU inputs (f32 accumulation) and, on
    # v6e/v7x, the bf16 exp / approx reciprocal in the softmax.
    if not jnp.allclose(out, ref, atol=4e-2, rtol=3e-2):
        raise AssertionError("Pallas kernel (batch-folded) mismatch vs reference")

    # Multi-grid-step path (exercises the parallel grid axis / pipelining).
    out2 = attention_forward(x, params, num_heads, batch_block=1)
    jax.block_until_ready(out2)
    if not jnp.allclose(out2, ref, atol=4e-2, rtol=3e-2):
        raise AssertionError("Pallas kernel (per-batch grid) mismatch vs reference")

    print("KERNEL_OK")
</pallas_src>

<mosaic_0001>
module attributes {stable_mosaic.version = 11 : i64} {
  func.func @_attention_kernel(%arg0: i32, %arg1: memref<128x64xf32, #tpu.memory_space<vmem>>, %arg2: memref<64x128xbf16, #tpu.memory_space<vmem>>, %arg3: memref<1x128xf32, #tpu.memory_space<vmem>>, %arg4: memref<256x32xbf16, #tpu.memory_space<vmem>>, %arg5: memref<128x64xf32, #tpu.memory_space<vmem>>) attributes {dimension_semantics = [#tpu.dimension_semantics<parallel>], iteration_bounds = array<i64: 1>, scalar_prefetch = 0 : i64, scratch_operands = 0 : i64, tpu.core_type = #tpu.core_type<tc>, window_params = [{transform_indices = @transform_0, window_bounds = array<i64: 128, 64>}, {pipeline_mode = #tpu.pipeline_mode<synchronous>, transform_indices = @transform_1, window_bounds = array<i64: 64, 128>}, {pipeline_mode = #tpu.pipeline_mode<synchronous>, transform_indices = @transform_2, window_bounds = array<i64: 1, 128>}, {pipeline_mode = #tpu.pipeline_mode<synchronous>, transform_indices = @transform_3, window_bounds = array<i64: 256, 32>}, {transform_indices = @transform_4, window_bounds = array<i64: 128, 64>}]} {
    %c0 = arith.constant 0 : index
    %c0_0 = arith.constant 0 : index
    %0 = vector.load %arg1[%c0, %c0_0] : memref<128x64xf32, #tpu.memory_space<vmem>>, vector<128x64xf32>
    %1 = arith.truncf %0 : vector<128x64xf32> to vector<128x64xbf16>
    %c0_1 = arith.constant 0 : index
    %c0_2 = arith.constant 0 : index
    %2 = vector.load %arg2[%c0_1, %c0_2] : memref<64x128xbf16, #tpu.memory_space<vmem>>, vector<64x128xbf16>
    %cst = arith.constant dense<0.000000e+00> : vector<128x128xf32>
    %3 = tpu.matmul %1, %2, %cst {dimension_numbers = #tpu.dot_dimension_numbers<[1], [0], [0], [1], [0, 0, 1, 1], [], []>} : vector<128x64xbf16>, vector<64x128xbf16>, vector<128x128xf32> -> vector<128x128xf32>
    %c0_3 = arith.constant 0 : index
    %c0_4 = arith.constant 0 : index
    %4 = vector.load %arg3[%c0_3, %c0_4] : memref<1x128xf32, #tpu.memory_space<vmem>>, vector<1x128xf32>
    %5 = vector.broadcast %4 : vector<1x128xf32> to vector<128x128xf32>
    %6 = arith.addf %3, %5 : vector<128x128xf32>
    %7 = vector.extract_strided_slice %6 {offsets = [0, 96], sizes = [128, 32], strides = [1, 1]} : vector<128x128xf32> to vector<128x32xf32>
    %8 = vector.extract_strided_slice %0 {offsets = [0, 32], sizes = [128, 32], strides = [1, 1]} : vector<128x64xf32> to vector<128x32xf32>
    %9 = arith.addf %7, %8 : vector<128x32xf32>
    %c0_5 = arith.constant 0 : index
    %c32 = arith.constant 32 : index
    %10 = vector.load %arg5[%c0_5, %c32] : memref<128x64xf32, #tpu.memory_space<vmem>>, vector<128x32xf32>
    tpu.vector_store %arg5[%c0_5, %c32], %9 {strides = array<i32>} : memref<128x64xf32, #tpu.memory_space<vmem>>, vector<128x32xf32>,
    %c0_6 = arith.constant 0 : index
    %c0_7 = arith.constant 0 : index
    %11 = vector.load %arg4[%c0_6, %c0_7] : memref<256x32xbf16, #tpu.memory_space<vmem>>, vector<256x32xbf16>
    %12 = arith.extf %11 : vector<256x32xbf16> to vector<256x32xf32>
    %13 = vector.extract_strided_slice %6 {offsets = [0, 0], sizes = [64, 128], strides = [1, 1]} : vector<128x128xf32> to vector<64x128xf32>
    %14 = vector.extract_strided_slice %13 {offsets = [0, 0], sizes = [64, 32], strides = [1, 1]} : vector<64x128xf32> to vector<64x32xf32>
    %15 = arith.truncf %14 : vector<64x32xf32> to vector<64x32xbf16>
    %16 = vector.extract_strided_slice %13 {offsets = [0, 32], sizes = [64, 32], strides = [1, 1]} : vector<64x128xf32> to vector<64x32xf32>
    %17 = vector.extract_strided_slice %13 {offsets = [0, 64], sizes = [64, 32], strides = [1, 1]} : vector<64x128xf32> to vector<64x32xf32>
    %18 = tpu.concatenate %16, %16, %16, %16 in 0 : vector<64x32xf32>, vector<64x32xf32>, vector<64x32xf32>, vector<64x32xf32> -> vector<256x32xf32>
    %19 = arith.mulf %18, %12 : vector<256x32xf32>
    %20 = tpu.concatenate %17, %17, %17, %17 in 0 : vector<64x32xf32>, vector<64x32xf32>, vector<64x32xf32>, vector<64x32xf32> -> vector<256x32xf32>
    %21 = arith.mulf %20, %12 : vector<256x32xf32>
    %22 = arith.truncf %19 : vector<256x32xf32> to vector<256x32xbf16>
    %23 = arith.truncf %21 : vector<256x32xf32> to vector<256x32xbf16>
    %cst_8 = arith.constant dense<0.000000e+00> : vector<64x256xf32>
    %24 = tpu.matmul %15, %22, %cst_8 {dimension_numbers = #tpu.dot_dimension_numbers<[1], [1], [0], [0], [0, 0, 1, 0], [], []>} : vector<64x32xbf16>, vector<256x32xbf16>, vector<64x256xf32> -> vector<64x256xf32>
    %cst_9 = arith.constant dense<0xFF800000> : vector<64xf32>
    %25 = vector.multi_reduction <maximumf>, %24, %cst_9 [1] : vector<64x256xf32> to vector<64xf32>
    %26 = vector.shape_cast %25 : vector<64xf32> to vector<64x1xf32>
    %27 = vector.broadcast %26 : vector<64x1xf32> to vector<64x256xf32>
    %28 = arith.subf %24, %27 : vector<64x256xf32>
    %29 = math.exp %28 : vector<64x256xf32>
    %30 = arith.truncf %29 : vector<64x256xf32> to vector<64x256xbf16>
    %31 = tpu.concatenate %23, %11 in 1 : vector<256x32xbf16>, vector<256x32xbf16> -> vector<256x64xbf16>
    %cst_10 = arith.constant dense<0.000000e+00> : vector<64x64xf32>
    %32 = tpu.matmul %30, %31, %cst_10 {dimension_numbers = #tpu.dot_dimension_numbers<[1], [0], [0], [1], [0, 0, 1, 1], [], []>} : vector<64x256xbf16>, vector<256x64xbf16>, vector<64x64xf32> -> vector<64x64xf32>
    %33 = vector.extract_strided_slice %32 {offsets = [0, 32], sizes = [64, 32], strides = [1, 1]} : vector<64x64xf32> to vector<64x32xf32>
    %cst_11 = arith.constant 1.000000e-30 : f32
    %34 = vector.broadcast %cst_11 : f32 to vector<64x32xf32>
    %35 = arith.maximumf %33, %34 : vector<64x32xf32>
    %36 = vector.extract_strided_slice %32 {offsets = [0, 0], sizes = [64, 32], strides = [1, 1]} : vector<64x64xf32> to vector<64x32xf32>
    %37 = tpu.reciprocal %35 {approx = true} : vector<64x32xf32> -> vector<64x32xf32>
    %38 = arith.mulf %36, %37 : vector<64x32xf32>
    %39 = vector.extract_strided_slice %0 {offsets = [0, 0], sizes = [64, 32], strides = [1, 1]} : vector<128x64xf32> to vector<64x32xf32>
    %40 = arith.addf %38, %39 : vector<64x32xf32>
    %c0_12 = arith.constant 0 : index
    %c0_13 = arith.constant 0 : index
    %41 = vector.load %arg5[%c0_12, %c0_13] : memref<128x64xf32, #tpu.memory_space<vmem>>, vector<64x32xf32>
    tpu.vector_store %arg5[%c0_12, %c0_13], %40 {strides = array<i32>} : memref<128x64xf32, #tpu.memory_space<vmem>>, vector<64x32xf32>,
    %42 = vector.extract_strided_slice %6 {offsets = [64, 0], sizes = [64, 128], strides = [1, 1]} : vector<128x128xf32> to vector<64x128xf32>
    %43 = vector.extract_strided_slice %42 {offsets = [0, 0], sizes = [64, 32], strides = [1, 1]} : vector<64x128xf32> to vector<64x32xf32>
    %44 = arith.truncf %43 : vector<64x32xf32> to vector<64x32xbf16>
    %45 = vector.extract_strided_slice %42 {offsets = [0, 32], sizes = [64, 32], strides = [1, 1]} : vector<64x128xf32> to vector<64x32xf32>
    %46 = vector.extract_strided_slice %42 {offsets = [0, 64], sizes = [64, 32], strides = [1, 1]} : vector<64x128xf32> to vector<64x32xf32>
    %47 = tpu.concatenate %45, %45, %45, %45 in 0 : vector<64x32xf32>, vector<64x32xf32>, vector<64x32xf32>, vector<64x32xf32> -> vector<256x32xf32>
    %48 = arith.mulf %47, %12 : vector<256x32xf32>
    %49 = tpu.concatenate %46, %46, %46, %46 in 0 : vector<64x32xf32>, vector<64x32xf32>, vector<64x32xf32>, vector<64x32xf32> -> vector<256x32xf32>
    %50 = arith.mulf %49, %12 : vector<256x32xf32>
    %51 = arith.truncf %48 : vector<256x32xf32> to vector<256x32xbf16>
    %52 = arith.truncf %50 : vector<256x32xf32> to vector<256x32xbf16>
    %cst_14 = arith.constant dense<0.000000e+00> : vector<64x256xf32>
    %53 = tpu.matmul %44, %51, %cst_14 {dimension_numbers = #tpu.dot_dimension_numbers<[1], [1], [0], [0], [0, 0, 1, 0], [], []>} : vector<64x32xbf16>, vector<256x32xbf16>, vector<64x256xf32> -> vector<64x256xf32>
    %cst_15 = arith.constant dense<0xFF800000> : vector<64xf32>
    %54 = vector.multi_reduction <maximumf>, %53, %cst_15 [1] : vector<64x256xf32> to vector<64xf32>
    %55 = vector.shape_cast %54 : vector<64xf32> to vector<64x1xf32>
    %56 = vector.broadcast %55 : vector<64x1xf32> to vector<64x256xf32>
    %57 = arith.subf %53, %56 : vector<64x256xf32>
    %58 = math.exp %57 : vector<64x256xf32>
    %59 = arith.truncf %58 : vector<64x256xf32> to vector<64x256xbf16>
    %60 = tpu.concatenate %52, %11 in 1 : vector<256x32xbf16>, vector<256x32xbf16> -> vector<256x64xbf16>
    %cst_16 = arith.constant dense<0.000000e+00> : vector<64x64xf32>
    %61 = tpu.matmul %59, %60, %cst_16 {dimension_numbers = #tpu.dot_dimension_numbers<[1], [0], [0], [1], [0, 0, 1, 1], [], []>} : vector<64x256xbf16>, vector<256x64xbf16>, vector<64x64xf32> -> vector<64x64xf32>
    %62 = vector.extract_strided_slice %61 {offsets = [0, 32], sizes = [64, 32], strides = [1, 1]} : vector<64x64xf32> to vector<64x32xf32>
    %cst_17 = arith.constant 1.000000e-30 : f32
    %63 = vector.broadcast %cst_17 : f32 to vector<64x32xf32>
    %64 = arith.maximumf %62, %63 : vector<64x32xf32>
    %65 = vector.extract_strided_slice %61 {offsets = [0, 0], sizes = [64, 32], strides = [1, 1]} : vector<64x64xf32> to vector<64x32xf32>
    %66 = tpu.reciprocal %64 {approx = true} : vector<64x32xf32> -> vector<64x32xf32>
    %67 = arith.mulf %65, %66 : vector<64x32xf32>
    %68 = vector.extract_strided_slice %0 {offsets = [64, 0], sizes = [64, 32], strides = [1, 1]} : vector<128x64xf32> to vector<64x32xf32>
    %69 = arith.addf %67, %68 : vector<64x32xf32>
    %c64 = arith.constant 64 : index
    %c0_18 = arith.constant 0 : index
    %70 = vector.load %arg5[%c64, %c0_18] : memref<128x64xf32, #tpu.memory_space<vmem>>, vector<64x32xf32>
    tpu.vector_store %arg5[%c64, %c0_18], %69 {strides = array<i32>} : memref<128x64xf32, #tpu.memory_space<vmem>>, vector<64x32xf32>,
    return
  }
  func.func @transform_0(%arg0: i32) -> (i32, i32) {
    %c0_i32 = arith.constant 0 : i32
    %c0_i32_0 = arith.constant 0 : i32
    return %arg0, %c0_i32 : i32, i32
  }
  func.func @transform_1(%arg0: i32) -> (i32, i32) {
    %c0_i32 = arith.constant 0 : i32
    %c0_i32_0 = arith.constant 0 : i32
    %c0_i32_1 = arith.constant 0 : i32
    return %c0_i32, %c0_i32_0 : i32, i32
  }
  func.func @transform_2(%arg0: i32) -> (i32, i32) {
    %c0_i32 = arith.constant 0 : i32
    %c0_i32_0 = arith.constant 0 : i32
    %c0_i32_1 = arith.constant 0 : i32
    return %c0_i32, %c0_i32_0 : i32, i32
  }
  func.func @transform_3(%arg0: i32) -> (i32, i32) {
    %c0_i32 = arith.constant 0 : i32
    %c0_i32_0 = arith.constant 0 : i32
    %c0_i32_1 = arith.constant 0 : i32
    return %c0_i32, %c0_i32_0 : i32, i32
  }
  func.func @transform_4(%arg0: i32) -> (i32, i32) {
    %c0_i32 = arith.constant 0 : i32
    %c0_i32_0 = arith.constant 0 : i32
    return %arg0, %c0_i32 : i32, i32
  }
}

</mosaic_0001>

<bundles_post_ra>
// kernel: tpu_custom_call.1
= control target key start
LH: loop header
LB: loop body
LE: loop exit
PB: predicated region body
PF: predicated region fallthrough
CT: control target
= control target key end

     0   :  { %vm81_vm0 = vcmask 523264   ;;  %s2501_s20 = smov 32   ;;  %vm800_vm1 = vcmask 261120   ;;  %s2503_s9 = smov 64   ;;  %vm347_vm2 = vcmask 523520   ;;  %s4402_s1 = inlined_call_operand.vmem [shape: bf16[64,128], index: 1, kind: input, shape index: {}]   ;;  %s4403_s0 = inlined_call_operand.vmem [shape: f32[128,64], index: 0, kind: input, shape index: {}]   ;;  %s4404_s3 = inlined_call_operand.vmem [shape: bf16[256,32], index: 3, kind: input, shape index: {}]   ;;  %s4405_s2 = inlined_call_operand.vmem [shape: f32[1,128], index: 2, kind: input, shape index: {}]   ;;  %s4406_s4 = inlined_call_operand.vmem [shape: f32[128,64], index: 4, kind: output, shape index: {}]  }
   0x1   :  { %v2353_v0 = vld [vmem:[%s4402_s1] sm:$0xff]   ;;  %v2354_v1 = vld [vmem:[%s4402_s1 + $0x8] sm:$0xff]   ;;  %v2355_v2 = vld [vmem:[%s4402_s1 + $0x10] sm:$0xff]  }
   0x2   :  { %2150 = vmatprep.subr.bf16.mxu0 %v2353_v0  ;;  %v18_v3 = vld [vmem:[%s4403_s0] sm:$0xff]  ;;  %v19_v4 = vld [vmem:[%s4403_s0 + $0x8] sm:$0xff]  ;;  %v2356_v6 = vld [vmem:[%s4402_s1 + $0x18] sm:$0xff]  }
   0x3   :  { %2151 = vmatpush3.bf16.msra.mxu0 %v2353_v0  ;;  %v34_v5 = vpack.c.bf16 %v19_v4, %v18_v3  ;;  %v2551_v7 = vld [vmem:[%s4404_s3 + $0x8] sm:$0xff]   ;;  %v2556_v8 = vld [vmem:[%s4404_s3] sm:$0xff]   ;;  %v20_v14 = vld [vmem:[%s4403_s0 + $0x10] sm:$0xff] }
   0x4   :  { %2152 = vmatprep.subr.bf16.mxu0 %v2354_v1  ;;  %4515 = vst [vmem:[#allocation2_spill] sm:$0xff] %v2551_v7  ;;  %4516 = vst [vmem:[#allocation3_spill] sm:$0xff] %v2556_v8  ;;  %v398_v9 = vunpack.c.l.bf16 %v2551_v7  ;;  %v399_v10 = vunpack.c.h.bf16 %v2551_v7  ;;  %v396_v11 = vunpack.c.l.bf16 %v2556_v8  ;;  %v2564_v12 = vld [vmem:[%s4404_s3 + $0x48] sm:$0xff]   ;;  %v2569_v13 = vld [vmem:[%s4404_s3 + $0x40] sm:$0xff]   ;;  %v397_v16 = vunpack.c.h.bf16 %v2556_v8 }
   0x5   :  { %2158 = vmatprep.mubr.msk.bf16.mxu0 %vm81_vm0, %v34_v5  ;;  %4517 = vst [vmem:[#allocation4_spill] sm:$0xff] %v2564_v12  ;;  %4518 = vst [vmem:[#allocation5_spill] sm:$0xff] %v2569_v13  ;;  %v21_v15 = vld [vmem:[%s4403_s0 + $0x18] sm:$0xff]  ;;  %v414_v17 = vunpack.c.l.bf16 %v2564_v12  ;;  %v415_v18 = vunpack.c.h.bf16 %v2564_v12  ;;  %v412_v19 = vunpack.c.l.bf16 %v2569_v13  ;;  %v2584_v20 = vld [vmem:[%s4404_s3 + $0x50] sm:$0xff]   ;;  %v413_v24 = vunpack.c.h.bf16 %v2569_v13 }
   0x6   :  { %4519 = vst [vmem:[#allocation6_spill] sm:$0xff] %v2584_v20  ;;  %v22_v21 = vld [vmem:[%s4403_s0 + $0x20] sm:$0xff]  ;;  %v23_v22 = vld [vmem:[%s4403_s0 + $0x28] sm:$0xff]  ;;  %v2592_v23 = vpack.i.bf16 %v399_v10, %v398_v9  ;;  %v2598_v25 = vld [vmem:[%s4404_s3 + $0x10] sm:$0xff]   ;;  %v2600_v26 = vpack.i.bf16 %v397_v16, %v396_v11  ;;  %v35_v27 = vpack.c.bf16 %v21_v15, %v20_v14  ;;  %v416_v29 = vunpack.c.l.bf16 %v2584_v20 }
   0x7   :  { %2153 = vmatpush3.bf16.msra.mxu0 %v2354_v1  ;;  %4520 = vst [vmem:[#allocation7_spill] sm:$0xff] %v2598_v25  ;;  %v2604_v28 = vpack.i.bf16 %v415_v18, %v414_v17  ;;  %v417_v30 = vunpack.c.h.bf16 %v2584_v20  ;;  %v36_v31 = vpack.c.bf16 %v23_v22, %v22_v21  ;;  %v2610_v32 = vpack.i.bf16 %v413_v24, %v412_v19  ;;  %v2617_v35 = vld [vmem:[%s4404_s3 + $0x58] sm:$0xff]   ;;  %v24_v40 = vld [vmem:[%s4403_s0 + $0x30] sm:$0xff]  ;;  %v2647_v45 = vld [vmem:[%s4404_s3 + $0x60] sm:$0xff]  }
   0x8   :  { %2154 = vmatprep.subr.bf16.mxu0 %v2355_v2  ;;  %2204 = vrot.lane.b32.xlu1 %v2592_v23, %s2501_s20  ;;  %v400_v33 = vunpack.c.l.bf16 %v2598_v25  ;;  %v401_v34 = vunpack.c.h.bf16 %v2598_v25  ;;  %4521 = vst [vmem:[#allocation8_spill] sm:$0xff] %v2617_v35  ;;  %v2622_v36 = vld [vmem:[%s4404_s3 + $0x18] sm:$0xff]   ;;  %v418_v38 = vunpack.c.l.bf16 %v2617_v35  ;;  %v419_v39 = vunpack.c.h.bf16 %v2617_v35  ;;  %4523 = vst [vmem:[#allocation10_spill] sm:$0xff] %v2647_v45  ;;  %v26_v46 = vld [vmem:[%s4403_s0 + $0x40] sm:$0xff] }
   0x9   :  { %2194 = vrot.lane.b32.xlu0 %v2600_v26, %s2501_s20  ;;  %4522 = vst [vmem:[#allocation9_spill] sm:$0xff] %v2622_v36  ;;  %v2627_v37 = vpack.i.bf16 %v417_v30, %v416_v29  ;;  %v25_v41 = vld [vmem:[%s4403_s0 + $0x38] sm:$0xff]  ;;  %v402_v43 = vunpack.c.l.bf16 %v2622_v36  ;;  %v403_v44 = vunpack.c.h.bf16 %v2622_v36  ;;  %v27_v47 = vld [vmem:[%s4403_s0 + $0x48] sm:$0xff]  ;;  %v2658_v48 = vld [vmem:[%s4404_s3 + $0x20] sm:$0xff]   ;;  %v420_v51 = vunpack.c.l.bf16 %v2647_v45 }
   0xa   :  { %v2640_v42 = vpack.i.bf16 %v401_v34, %v400_v33  ;;  %4524 = vst [vmem:[#allocation11_spill] sm:$0xff] %v2658_v48  ;;  %v37_v49 = vpack.c.bf16 %v25_v41, %v24_v40  ;;  %v2662_v50 = vpack.i.bf16 %v419_v39, %v418_v38  ;;  %v421_v52 = vunpack.c.h.bf16 %v2647_v45  ;;  %v2675_v57 = vld [vmem:[%s4404_s3 + $0x68] sm:$0xff]   ;;  %v28_v62 = vld [vmem:[%s4403_s0 + $0x50] sm:$0xff]  ;;  %v29_v63 = vld [vmem:[%s4403_s0 + $0x58] sm:$0xff] }
   0xb   :  { %2155 = vmatpush3.bf16.msra.mxu0 %v2355_v2  ;;  %v38_v53 = vpack.c.bf16 %v27_v47, %v26_v46  ;;  %v2668_v54 = vpack.i.bf16 %v403_v44, %v402_v43  ;;  %v404_v55 = vunpack.c.l.bf16 %v2658_v48  ;;  %v405_v56 = vunpack.c.h.bf16 %v2658_v48  ;;  %4525 = vst [vmem:[#allocation12_spill] sm:$0xff] %v2675_v57  ;;  %v2680_v58 = vld [vmem:[%s4404_s3 + $0x28] sm:$0xff]   ;;  %v2705_v3 = vld [vmem:[%s4404_s3 + $0x70] sm:$0xff]   ;;  %v30_v4 = vld [vmem:[%s4403_s0 + $0x60] sm:$0xff] }
   0xc   :  { %2156 = vmatprep.subr.bf16.mxu0 %v2356_v6  ;;  %2209 = vrot.lane.b32.xlu1 %v2604_v28, %s2501_s20  ;;  %4526 = vst [vmem:[#allocation13_spill] sm:$0xff] %v2680_v58  ;;  %v2685_v59 = vpack.i.bf16 %v421_v52, %v420_v51  ;;  %v422_v60 = vunpack.c.l.bf16 %v2675_v57  ;;  %v423_v61 = vunpack.c.h.bf16 %v2675_v57  ;;  %v406_v1 = vunpack.c.l.bf16 %v2680_v58  ;;  %4527 = vst [vmem:[#allocation14_spill] sm:$0xff] %v2705_v3  ;;  %v31_v5 = vld [vmem:[%s4403_s0 + $0x68] sm:$0xff]  ;;  %v2733_v19 = vld [vmem:[%s4404_s3 + $0x78] sm:$0xff]  }
   0xd   :  { %2199 = vrot.lane.b32.xlu0 %v2610_v32, %s2501_s20  ;;  %v2698_v0 = vpack.i.bf16 %v405_v56, %v404_v55  ;;  %v407_v2 = vunpack.c.h.bf16 %v2680_v58  ;;  %v39_v9 = vpack.c.bf16 %v29_v63, %v28_v62  ;;  %v424_v11 = vunpack.c.l.bf16 %v2705_v3  ;;  %4529 = vst [vmem:[#allocation16_spill] sm:$0xff] %v2733_v19  ;;  %v2738_v21 = vld [vmem:[%s4404_s3 + $0x38] sm:$0xff]   ;;  %v32_v29 = vld [vmem:[%s4403_s0 + $0x70] sm:$0xff] }
   0xe   :  { %v2720_v10 = vpack.i.bf16 %v423_v61, %v422_v60  ;;  %v425_v14 = vunpack.c.h.bf16 %v2705_v3  ;;  %v40_v15 = vpack.c.bf16 %v31_v5, %v30_v4  ;;  %4530 = vst [vmem:[#allocation17_spill] sm:$0xff] %v2738_v21  ;;  %v426_v24 = vunpack.c.l.bf16 %v2733_v19  ;;  %v33_v30 = vld [vmem:[%s4403_s0 + $0x78] sm:$0xff]  ;;  %v2806_v5 = vld [vmem:[%s4405_s2] ss:$0 sm:$0xff]  ;;  %s2502_s2 = smov 96  }
   0xf   :  { %2157 = vmatpush3.bf16.msra.mxu0 %v2356_v6  ;;  %v2716_v6 = vld [vmem:[%s4404_s3 + $0x30] sm:$0xff]   ;;  %v2726_v16 = vpack.i.bf16 %v407_v2, %v406_v1  ;;  %v410_v33 = vunpack.c.l.bf16 %v2738_v21  ;;  %v411_v34 = vunpack.c.h.bf16 %v2738_v21  ;;  %v41_v38 = vpack.c.bf16 %v33_v30, %v32_v29 }
  0x10   :  { %2219 = vrot.lane.b32.xlu1 %v2627_v37, %s2501_s20  ;;  %4528 = vst [vmem:[#allocation15_spill] sm:$0xff] %v2716_v6  ;;  %v408_v17 = vunpack.c.l.bf16 %v2716_v6  ;;  %v409_v18 = vunpack.c.h.bf16 %v2716_v6  ;;  %v2743_v22 = vpack.i.bf16 %v425_v14, %v424_v11 }
  0x11   :  { %2214 = vrot.lane.b32.xlu0 %v2640_v42, %s2501_s20  ;;  %v2766_v40 = vpack.i.bf16 %v411_v34, %v410_v33 }
  0x12   :  { %2159 = vmatmul.mubr.msk.bf16.vlgmr.msra.gmra.mrb[0].mxu0 %vm81_vm0, %v35_v27  ;;  %4531 = vst [vmem:[#allocation18_spill] sm:$0xff] %v2743_v22  ;;  %v427_v27 = vunpack.c.h.bf16 %v2733_v19 }
  0x13   :  { %2162 = vmatprep.mubr.msk.bf16.mxu0 %vm81_vm0, %v36_v31  ;;  %v2756_v31 = vpack.i.bf16 %v409_v18, %v408_v17  ;;  %4533 = vst [vmem:[#allocation20_spill] sm:$0xff] %v2766_v40 }
  0x14   :  { %2229 = vrot.lane.b32.xlu1 %v2662_v50, %s2501_s20  ;;  %v2762_v39 = vpack.i.bf16 %v427_v27, %v426_v24 }
  0x15   :  { %2224 = vrot.lane.b32.xlu0 %v2668_v54, %s2501_s20 }
  0x16   :  { %4532 = vst [vmem:[#allocation19_spill] sm:$0xff] %v2762_v39 }
  0x18   :  { %2239 = vrot.lane.b32.xlu1 %v2685_v59, %s2501_s20 }
  0x19   :  { %2234 = vrot.lane.b32.xlu0 %v2698_v0, %s2501_s20 }
  0x1a   :  { %2163 = vmatmul.mubr.msk.bf16.gmra.mrb[4].mxu0 %vm81_vm0, %v37_v49 }
  0x1b   :  { %2166 = vmatprep.mubr.msk.bf16.mxu0 %vm81_vm0, %v38_v53 }
  0x1c   :  { %2249 = vrot.lane.b32.xlu1 %v2720_v10, %s2501_s20 }
  0x1d   :  { %2244 = vrot.lane.b32.xlu0 %v2726_v16, %s2501_s20 }
  0x20   :  { %2259 = vrot.lane.b32.xlu1 %v2743_v22, %s2501_s20 }
  0x21   :  { %2254 = vrot.lane.b32.xlu0 %v2756_v31, %s2501_s20 }
  0x22   :  { %2167 = vmatmul.mubr.msk.bf16.gmra.mrb[8].mxu0 %vm81_vm0, %v39_v9 }
  0x23   :  { %2170 = vmatprep.mubr.msk.bf16.mxu0 %vm81_vm0, %v40_v15 }
  0x24   :  { %2269 = vrot.lane.b32.xlu1 %v2762_v39, %s2501_s20 }
  0x25   :  { %2264 = vrot.lane.b32.xlu0 %v2766_v40, %s2501_s20 }
  0x2a   :  { %2171 = vmatmul.mubr.msk.bf16.gmra.mrb[12].mxu0 %vm81_vm0, %v41_v38 }
  0x7a   :  { %v2773_v41 = vpop.permute.xlu1 %2204 }
  0x7b   :  { %v2775_v43 = vpop.permute.xlu0 %2194 }
  0x7c   :  { %v4413_v63 = vunpack.i.h.bf16 %v2775_v43  ;;  %v4411_v1 = vunpack.i.l.bf16 %v2775_v43 }
  0x7e   :  { %v2777_v44 = vpop.permute.xlu1 %2209 }
  0x7f   :  { %v2779_v46 = vpop.permute.xlu0 %2199  ;;  %v4539_v38 = vunpack.i.h.bf16 %v2777_v44  ;;  %v4541_v2 = vunpack.i.l.bf16 %v2777_v44 }
  0x80   :  { %v4410_v11 = vunpack.i.h.bf16 %v2779_v46  ;;  %v4407_v14 = vunpack.i.l.bf16 %v2779_v46 }
  0x82   :  { %v2781_v47 = vpop.permute.xlu1 %2219 }
  0x83   :  { %v2783_v49 = vpop.permute.xlu0 %2214 }
  0x86   :  { %v2785_v51 = vpop.permute.xlu1 %2229 }
  0x87   :  { %v2787_v52 = vpop.permute.xlu0 %2224 }
  0x88   :  { %v4560_v35 = vunpack.i.h.bf16 %v2787_v52 }
  0x8a   :  { %v2789_v53 = vpop.permute.xlu1 %2239 }
  0x8b   :  { %v2791_v55 = vpop.permute.xlu0 %2234  ;;  %v4542_v57 = vunpack.i.h.bf16 %v2789_v53 }
  0x8c   :  { %v4581_v40 = vunpack.i.l.bf16 %v2791_v55 }
  0x8e   :  { %v2793_v56 = vpop.permute.xlu1 %2249 }
  0x8f   :  { %v2795_v60 = vpop.permute.xlu0 %2244  ;;  %v4583_v22 = vunpack.i.h.bf16 %v2793_v56 }
  0x90   :  { %v4561_v25 = vunpack.i.l.bf16 %v2795_v60 }
  0x92   :  { %v2808_v9 = vpop.permute.xlu1 %2259 }
  0x93   :  { %v2818_v34 = vpop.permute.xlu0 %2254 }
  0x96   :  { %v2846_v27 = vpop.permute.xlu1 %2269 }
  0x97   :  { %v2867_v19 = vpop.permute.xlu0 %2264 }
  0xe5   :  { %v2160_v18 = vpop.f32.mrb[0].mxu0 }
  0xe6   :  { %v140_v33 = vpop.f32.mrb[1].mxu0  ;;  %v2840_v24 = vadd.f32 %v2160_v18, %v2806_v5 }
  0xe7   :  { %v2824_v17 = vadd.f32 %v2806_v5, %v140_v33  ;;  %v2161_v4 = vpop.f32.mrb[2].mxu0 }
  0xe8   :  { %v2830_v30 = vadd.f32 %v2161_v4, %v2806_v5  ;;  %v143_v61 = vpop.f32.mrb[3].mxu0  ;;  %4537 = vst [vmem:[#allocation24_spill] sm:$0xff] %v2840_v24  ;;  %v578_v58 = vmul.f32 %v4541_v2, %v2840_v24 }
  0xe9   :  { %4534 = vst [vmem:[#allocation21_spill] sm:$0xff] %v2824_v17  ;;  %v2836_v33 = vadd.f32 %v2806_v5, %v143_v61  ;;  %v576_v4 = vmul.f32 %v4407_v14, %v2824_v17  ;;  %v560_v18 = vmul.f32 %v4411_v1, %v2824_v17 }
  0xea   :  { %4535 = vst [vmem:[#allocation22_spill] sm:$0xff] %v2830_v30  ;;  %v579_v21 = vmul.f32 %v4539_v38, %v2830_v30 }
  0xeb   :  { %4536 = vst [vmem:[#allocation23_spill] sm:$0xff] %v2836_v33  ;;  %v2850_v62 = vpack.c.bf16 %v2836_v33, %v2824_v17  ;;  %v577_v61 = vmul.f32 %v4410_v11, %v2836_v33  ;;  %v561_v14 = vmul.f32 %v4413_v63, %v2836_v33  ;;  %v4540_v63 = vunpack.i.h.bf16 %v2773_v41 }
  0xec   :  { %v2882_v48 = vmul.f32 %v4542_v57, %v2836_v33  ;;  %v4546_v57 = vunpack.i.l.bf16 %v2773_v41  ;;  %v729_v38 = vpack.c.bf16 %v579_v21, %v578_v58  ;;  %v4552_v58 = vunpack.i.h.bf16 %v2791_v55 }
  0xed   :  { %4538 = vst [vmem:[#allocation25_spill] sm:$0xff] %v2850_v62  ;;  %v2164_v11 = vpop.f32.mrb[4].mxu0  ;;  %2038 = vmatprep.mubr.msk.bf16.mxu1 %vm800_vm1, %v2850_v62  ;;  %v728_v1 = vpack.c.bf16 %v577_v61, %v576_v4  ;;  %v720_v6 = vpack.c.bf16 %v561_v14, %v560_v18  ;;  %v563_v29 = vmul.f32 %v4540_v63, %v2830_v30  ;;  %v4543_v14 = vunpack.i.h.bf16 %v2793_v56 }
  0xee   :  { %v156_v3 = vpop.f32.mrb[5].mxu0  ;;  %v2890_v63 = vadd.f32 %v2164_v11, %v2806_v5  ;;  %v562_v2 = vmul.f32 %v4546_v57, %v2840_v24  ;;  %v2923_v21 = vmul.f32 %v4552_v58, %v2836_v33  ;;  %v4555_v58 = vunpack.i.h.bf16 %v2781_v47 }
  0xef   :  { %v2887_v4 = vmul.f32 %v4543_v14, %v2830_v30  ;;  %v2893_v61 = vadd.f32 %v2806_v5, %v156_v3  ;;  %v2165_v18 = vpop.f32.mrb[6].mxu0  ;;  %784 = vrot.lane.b32.xlu1 %v728_v1, %s2502_s2  ;;  %768 = vrot.lane.b32.xlu0 %v720_v6, %s2502_s2  ;;  %v4548_v3 = vunpack.i.l.bf16 %v2789_v53  ;;  %v4549_v1 = vunpack.i.l.bf16 %v2793_v56 }
  0xf0   :  { %4544 = vst [vmem:[#allocation26_spill] sm:$0xff] %v2890_v63  ;;  %v2902_v14 = vadd.f32 %v2165_v18, %v2806_v5  ;;  %v159_v11 = vpop.f32.mrb[7].mxu0  ;;  %v721_v57 = vpack.c.bf16 %v563_v29, %v562_v2  ;;  %v4551_v18 = vunpack.i.l.bf16 %v2781_v47  ;;  %v4558_v2 = vunpack.i.h.bf16 %v2783_v49 }
  0xf1   :  { %4545 = vst [vmem:[#allocation27_spill] sm:$0xff] %v2893_v61  ;;  %v2907_v62 = vmul.f32 %v4548_v3, %v2824_v17  ;;  %v2912_v6 = vmul.f32 %v4549_v1, %v2840_v24  ;;  %v2915_v45 = vadd.f32 %v2806_v5, %v159_v11  ;;  %v4553_v3 = vunpack.i.l.bf16 %v2783_v49 }
  0xf2   :  { %4547 = vst [vmem:[#allocation28_spill] sm:$0xff] %v2902_v14  ;;  %v580_v15 = vmul.f32 %v4551_v18, %v2893_v61  ;;  %v4554_v11 = vunpack.i.l.bf16 %v2791_v55  ;;  %v4556_v1 = vunpack.i.l.bf16 %v2785_v51 }
  0xf3   :  { %4550 = vst [vmem:[#allocation29_spill] sm:$0xff] %v2915_v45  ;;  %v564_v36 = vmul.f32 %v4553_v3, %v2893_v61  ;;  %786 = vrot.lane.b32.xlu1 %v729_v38, %s2502_s2  ;;  %770 = vrot.lane.b32.xlu0 %v721_v57, %s2502_s2  ;;  %v581_v3 = vmul.f32 %v4555_v58, %v2915_v45  ;;  %v4559_v57 = vunpack.i.l.bf16 %v2787_v52 }
  0xf4   :  { %v2933_v29 = vmul.f32 %v4554_v11, %v2824_v17  ;;  %v582_v33 = vmul.f32 %v4556_v1, %v2890_v63  ;;  %v4557_v11 = vunpack.i.h.bf16 %v2785_v51  ;;  %v565_v38 = vmul.f32 %v4558_v2, %v2915_v45 }
  0xf5   :  { %v566_v18 = vmul.f32 %v4559_v57, %v2890_v63  ;;  %v567_v58 = vmul.f32 %v4560_v35, %v2902_v14  ;;  %v2961_v1 = vmul.f32 %v4561_v25, %v2840_v24  ;;  %v2168_v7 = vpop.f32.mrb[8].mxu0  ;;  %v730_v2 = vpack.c.bf16 %v581_v3, %v580_v15 }
  0xf6   :  { %v583_v17 = vmul.f32 %v4557_v11, %v2902_v14  ;;  %v4562_v11 = vunpack.i.l.bf16 %v2846_v27  ;;  %v724_v12 = vpack.c.bf16 %v2923_v21, %v2933_v29  ;;  %v4563_v57 = vunpack.i.h.bf16 %v2795_v60  ;;  %v172_v3 = vpop.f32.mrb[9].mxu0 }
  0xf7   :  { %v4564_v35 = vunpack.i.l.bf16 %v2808_v9  ;;  %v4565_v24 = vunpack.i.l.bf16 %v2867_v19  ;;  %v2986_v15 = vadd.f32 %v2168_v7, %v2806_v5  ;;  %v722_v21 = vpack.c.bf16 %v565_v38, %v564_v36  ;;  %788 = vrot.lane.b32.xlu1 %v730_v2, %s2502_s2 }
  0xf8   :  { %v2966_v20 = vmul.f32 %v4562_v11, %v2890_v63  ;;  %v2973_v8 = vmul.f32 %v4563_v57, %v2830_v30  ;;  %v4567_v29 = vunpack.i.h.bf16 %v2808_v9  ;;  %v2994_v30 = vadd.f32 %v2806_v5, %v172_v3 }
  0xf9   :  { %v2978_v25 = vmul.f32 %v4564_v35, %v2893_v61  ;;  %v2983_v11 = vmul.f32 %v4565_v24, %v2890_v63  ;;  %4566 = vst [vmem:[#allocation30_spill] sm:$0xff] %v2986_v15  ;;  %v2169_v35 = vpop.f32.mrb[10].mxu0  ;;  %v731_v13 = vpack.c.bf16 %v583_v17, %v582_v33  ;;  %v723_v39 = vpack.c.bf16 %v567_v58, %v566_v18 }
  0xfa   :  { %v2991_v57 = vmul.f32 %v4567_v29, %v2915_v45  ;;  %4568 = vst [vmem:[#allocation31_spill] sm:$0xff] %v2994_v30  ;;  %v2998_v24 = vadd.f32 %v2169_v35, %v2806_v5  ;;  %772 = vrot.lane.b32.xlu0 %v722_v21, %s2502_s2  ;;  %v175_v7 = vpop.f32.mrb[11].mxu0  ;;  %v4570_v36 = vunpack.i.l.bf16 %v2777_v44  ;;  %v4571_v3 = vunpack.i.l.bf16 %v2773_v41 }
  0xfb   :  { %v4572_v17 = vunpack.i.l.bf16 %v2793_v56  ;;  %v3017_v18 = vadd.f32 %v2806_v5, %v175_v7  ;;  %v4575_v58 = vunpack.i.l.bf16 %v2779_v46  ;;  %v4576_v21 = vunpack.i.l.bf16 %v2789_v53  ;;  %790 = vrot.lane.b32.xlu1 %v731_v13, %s2502_s2 }
  0xfc   :  { %4569 = vst [vmem:[#allocation32_spill] sm:$0xff] %v2998_v24  ;;  %v3004_v38 = vmul.f32 %v4570_v36, %v2986_v15  ;;  %v3009_v29 = vmul.f32 %v4571_v3, %v2986_v15  ;;  %v4577_v36 = vunpack.i.l.bf16 %v2775_v43  ;;  %v4580_v63 = vunpack.i.h.bf16 %v2773_v41 }
  0xfd   :  { %v3014_v33 = vmul.f32 %v4572_v17, %v2986_v15  ;;  %4574 = vst [vmem:[#allocation34_spill] sm:$0xff] %v3017_v18  ;;  %v3022_v2 = vmul.f32 %v4575_v58, %v2994_v30  ;;  %v3027_v35 = vmul.f32 %v4576_v21, %v2994_v30  ;;  %v4579_v17 = vunpack.i.h.bf16 %v2777_v44 }
  0xfe   :  { %v3032_v3 = vmul.f32 %v4577_v36, %v2994_v30  ;;  %v3042_v58 = vmul.f32 %v4580_v63, %v2998_v24  ;;  %v3047_v21 = vmul.f32 %v4581_v40, %v2994_v30  ;;  %v3052_v36 = vmul.f32 %v4583_v22, %v2998_v24  ;;  %774 = vrot.lane.b32.xlu0 %v723_v39, %s2502_s2 }
  0xff   :  { %4573 = vst [vmem:[#allocation33_spill] sm:$0xff] %v3014_v33  ;;  %v3037_v7 = vmul.f32 %v4579_v17, %v2998_v24  ;;  %v4585_v44 = vunpack.i.h.bf16 %v2779_v46  ;;  %v4586_v41 = vunpack.i.h.bf16 %v2789_v53  ;;  %v4587_v40 = vunpack.i.h.bf16 %v2775_v43 }
 0x100   :  { %4578 = vst [vmem:[#allocation35_spill] sm:$0xff] %v3032_v3  ;;  %4582 = vst [vmem:[#allocation36_spill] sm:$0xff] %v3047_v21  ;;  %v4588_v22 = vunpack.i.h.bf16 %v2791_v55  ;;  %v4590_v43 = vunpack.i.l.bf16 %v2795_v60  ;;  %v4592_v53 = vunpack.i.l.bf16 %v2818_v34  ;;  %v4595_v39 = vunpack.i.h.bf16 %v2795_v60 }
 0x101   :  { %4584 = vst [vmem:[#allocation37_spill] sm:$0xff] %v3052_v36  ;;  %v3058_v17 = vmul.f32 %v4585_v44, %v3017_v18  ;;  %v3063_v63 = vmul.f32 %v4586_v41, %v3017_v18  ;;  %v3068_v30 = vmul.f32 %v4587_v40, %v3017_v18  ;;  %v2172_v41 = vpop.f32.mrb[12].mxu0  ;;  %v734_v60 = vpack.c.bf16 %v2991_v57, %v2978_v25 }
 0x102   :  { %v3073_v56 = vmul.f32 %v4588_v22, %v3017_v18  ;;  %v3085_v44 = vmul.f32 %v4590_v43, %v2986_v15  ;;  %v572_v46 = vmul.f32 %v4592_v53, %v2893_v61  ;;  %v4593_v43 = vunpack.i.h.bf16 %v2846_v27  ;;  %v188_v55 = vpop.f32.mrb[13].mxu0  ;;  %776 = vrot.lane.b32.xlu0 %v724_v12, %s2502_s2 }
 0x103   :  { %v3102_v33 = vadd.f32 %v2172_v41, %v2806_v5  ;;  %v3107_v36 = vmul.f32 %v4595_v39, %v2998_v24  ;;  %v4597_v22 = vunpack.i.h.bf16 %v2818_v34  ;;  %v3113_v21 = vadd.f32 %v2806_v5, %v188_v55  ;;  %v2173_v53 = vpop.f32.mrb[14].mxu0 }
 0x104   :  { %4589 = vst [vmem:[#allocation38_spill] sm:$0xff] %v3073_v56  ;;  %4591 = vst [vmem:[#allocation39_spill] sm:$0xff] %v3085_v44  ;;  %v591_v13 = vmul.f32 %v4593_v43, %v2902_v14  ;;  %v4599_v43 = vpack.c.bf16 %v2882_v48, %v2907_v62  ;;  %v725_v41 = vpack.c.bf16 %v2973_v8, %v2961_v1  ;;  %v4601_v55 = vunpack.i.l.bf16 %v2785_v51 }
 0x105   :  { %4594 = vst [vmem:[#allocation40_spill] sm:$0xff] %v3102_v33  ;;  %4596 = vst [vmem:[#allocation41_spill] sm:$0xff] %v3107_v36  ;;  %v573_v40 = vmul.f32 %v4597_v22, %v2915_v45  ;;  %v3124_v39 = vadd.f32 %v2173_v53, %v2806_v5  ;;  %v191_v22 = vpop.f32.mrb[15].mxu0  ;;  %v4602_v48 = vunpack.i.l.bf16 %v2787_v52  ;;  %v4604_v12 = vunpack.i.l.bf16 %v2781_v47 }
 0x106   :  { %4598 = vst [vmem:[#allocation42_spill] sm:$0xff] %v3113_v21  ;;  %792 = vrot.lane.b32.xlu1 %v4599_v43, %s2502_s2  ;;  %v3130_v56 = vmul.f32 %v4601_v55, %v3102_v33  ;;  %v3140_v1 = vadd.f32 %v2806_v5, %v191_v22  ;;  %v4605_v57 = vunpack.i.l.bf16 %v2783_v49  ;;  %v4606_v43 = vunpack.i.l.bf16 %v2808_v9  ;;  %778 = vrot.lane.b32.xlu0 %v725_v41, %s2502_s2 }
 0x107   :  { %4600 = vst [vmem:[#allocation43_spill] sm:$0xff] %v3124_v39  ;;  %v3135_v62 = vmul.f32 %v4602_v48, %v3102_v33  ;;  %v3145_v25 = vmul.f32 %v4604_v12, %v3113_v21  ;;  %v4607_v48 = vunpack.i.h.bf16 %v2785_v51  ;;  %v4608_v22 = vunpack.i.h.bf16 %v2787_v52 }
 0x108   :  { %4603 = vst [vmem:[#allocation44_spill] sm:$0xff] %v3140_v1  ;;  %v3150_v53 = vmul.f32 %v4605_v57, %v3113_v21  ;;  %v3155_v55 = vmul.f32 %v4606_v43, %v3113_v21  ;;  %v4609_v8 = vunpack.i.l.bf16 %v2818_v34  ;;  %v4610_v44 = vunpack.i.l.bf16 %v2867_v19 }
 0x109   :  { %v3160_v5 = vmul.f32 %v4607_v48, %v3124_v39  ;;  %v3165_v12 = vmul.f32 %v4608_v22, %v3124_v39  ;;  %v4611_v51 = vpack.c.bf16 %v2887_v4, %v2912_v6  ;;  %v4612_v52 = vunpack.i.h.bf16 %v2781_v47 }
 0x10a   :  { %v3170_v57 = vmul.f32 %v4609_v8, %v3113_v21  ;;  %v3175_v43 = vmul.f32 %v4610_v44, %v3102_v33  ;;  %v4613_v22 = vunpack.i.h.bf16 %v2783_v49  ;;  %v4614_v36 = vunpack.i.h.bf16 %v2808_v9 }
 0x10b   :  { %794 = vrot.lane.b32.xlu1 %v4611_v51, %s2502_s2  ;;  %v3184_v48 = vmul.f32 %v4612_v52, %v3140_v1  ;;  %v4615_v3 = vunpack.i.h.bf16 %v2818_v34  ;;  %v4616_v6 = vunpack.i.h.bf16 %v2867_v19  ;;  %v4617_v9 = vunpack.i.l.bf16 %v2846_v27 }
 0x10c   :  { %v3189_v8 = vmul.f32 %v4613_v22, %v3140_v1  ;;  %v3194_v44 = vmul.f32 %v4614_v36, %v3140_v1  ;;  %v726_v49 = vpack.c.bf16 %v573_v40, %v572_v46  ;;  %v4619_v34 = vunpack.i.h.bf16 %v2846_v27  ;;  %v4634_v27 = vld [vmem:[#allocation13_spill] sm:$0xff] }
 0x10d   :  { %v3199_v4 = vmul.f32 %v4615_v3, %v3140_v1  ;;  %v3209_v51 = vmul.f32 %v4616_v6, %v3124_v39  ;;  %v3214_v36 = vmul.f32 %v4617_v9, %v3102_v33  ;;  %v4618_v22 = vmov %v4616_v6 }
 0x10e   :  { %v575_v6 = vmul.f32 %v4618_v22, %v2902_v14  ;;  %v3232_v47 = vmul.f32 %v4619_v34, %v3124_v39  ;;  %780 = vrot.lane.b32.xlu0 %v726_v49, %s2502_s2  ;;  %v735_v41 = vpack.c.bf16 %v591_v13, %v2966_v20  ;;  %v4620_v20 = vld [vmem:[#allocation18_spill] sm:$0xff] }
 0x10f   :  { %796 = vrot.lane.b32.xlu1 %v734_v60, %s2502_s2  ;;  %v4636_v60 = vld [vmem:[#allocation15_spill] sm:$0xff] }
 0x110   :  { %v727_v19 = vpack.c.bf16 %v575_v6, %v2983_v11  ;;  %v4635_v11 = vld [vmem:[#allocation14_spill] sm:$0xff] }
 0x112   :  { %782 = vrot.lane.b32.xlu0 %v727_v19, %s2502_s2 }
 0x113   :  { %798 = vrot.lane.b32.xlu1 %v735_v41, %s2502_s2  ;;  %v4637_v41 = vld [vmem:[#allocation16_spill] sm:$0xff] }
 0x116   :  { %2274 = vrot.lane.b32.xlu0 %v2610_v32, %s2503_s9  ;;  %v4624_v32 = vld [vmem:[#allocation3_spill] sm:$0xff] }
 0x117   :  { %2279 = vrot.lane.b32.xlu1 %v2600_v26, %s2503_s9  ;;  %v4622_v26 = vld [vmem:[#allocation19_spill] sm:$0xff] }
 0x11a   :  { %2284 = vrot.lane.b32.xlu0 %v2604_v28, %s2503_s9  ;;  %v4623_v28 = vld [vmem:[#allocation5_spill] sm:$0xff] }
 0x11b   :  { %2289 = vrot.lane.b32.xlu1 %v2592_v23, %s2503_s9  ;;  %v4621_v23 = vld [vmem:[#allocation20_spill] sm:$0xff] }
 0x11e   :  { %2294 = vrot.lane.b32.xlu0 %v2627_v37, %s2503_s9  ;;  %v4625_v37 = vld [vmem:[#allocation4_spill] sm:$0xff] }
 0x11f   :  { %2299 = vrot.lane.b32.xlu1 %v2640_v42, %s2503_s9  ;;  %v4626_v42 = vld [vmem:[#allocation2_spill] sm:$0xff] }
 0x122   :  { %2304 = vrot.lane.b32.xlu0 %v2662_v50, %s2503_s9  ;;  %v4627_v50 = vld [vmem:[#allocation6_spill] sm:$0xff] }
 0x123   :  { %2309 = vrot.lane.b32.xlu1 %v2668_v54, %s2503_s9  ;;  %v4628_v54 = vld [vmem:[#allocation7_spill] sm:$0xff] }
 0x126   :  { %2314 = vrot.lane.b32.xlu0 %v2685_v59, %s2503_s9  ;;  %v4629_v59 = vld [vmem:[#allocation8_spill] sm:$0xff] }
 0x127   :  { %2319 = vrot.lane.b32.xlu1 %v2698_v0, %s2503_s9  ;;  %v4630_v0 = vld [vmem:[#allocation9_spill] sm:$0xff] }
 0x12a   :  { %2324 = vrot.lane.b32.xlu0 %v2720_v10, %s2503_s9  ;;  %v4631_v10 = vld [vmem:[#allocation10_spill] sm:$0xff] }
 0x12b   :  { %2329 = vrot.lane.b32.xlu1 %v2726_v16, %s2503_s9  ;;  %v4632_v16 = vld [vmem:[#allocation11_spill] sm:$0xff] }
 0x12e   :  { %2334 = vrot.lane.b32.xlu0 %v4620_v20, %s2503_s9  ;;  %v4638_v20 = vld [vmem:[#allocation17_spill] sm:$0xff] }
 0x12f   :  { %2339 = vrot.lane.b32.xlu1 %v2756_v31, %s2503_s9  ;;  %v4633_v31 = vld [vmem:[#allocation12_spill] sm:$0xff] }
 0x132   :  { %2344 = vrot.lane.b32.xlu0 %v4622_v26, %s2503_s9 }
 0x133   :  { %2349 = vrot.lane.b32.xlu1 %v4621_v23, %s2503_s9 }
 0x137   :  { %1158 = vrot.lane.b32.xlu1 %v4623_v28, %s2501_s20  ;;  %v4639_v28 = vpack.c.bf16 %v3037_v7, %v3004_v38 }
 0x13b   :  { %1142 = vrot.lane.b32.xlu1 %v4624_v32, %s2501_s20 }
 0x13f   :  { %1160 = vrot.lane.b32.xlu1 %v4625_v37, %s2501_s20 }
 0x143   :  { %1144 = vrot.lane.b32.xlu1 %v4626_v42, %s2501_s20 }
 0x147   :  { %1162 = vrot.lane.b32.xlu1 %v4627_v50, %s2501_s20  ;;  %v4640_v50 = vpack.c.bf16 %v3058_v17, %v3022_v2 }
 0x14b   :  { %1146 = vrot.lane.b32.xlu1 %v4628_v54, %s2501_s20 }
 0x14f   :  { %1164 = vrot.lane.b32.xlu1 %v4629_v59, %s2501_s20 }
 0x153   :  { %1148 = vrot.lane.b32.xlu1 %v4630_v0, %s2501_s20  ;;  %v4641_v0 = vpack.c.bf16 %v3063_v63, %v3027_v35 }
 0x157   :  { %1166 = vrot.lane.b32.xlu1 %v4631_v10, %s2501_s20 }
 0x15b   :  { %1150 = vrot.lane.b32.xlu1 %v4632_v16, %s2501_s20  ;;  %v4642_v16 = vpack.c.bf16 %v3160_v5, %v3130_v56 }
 0x15f   :  { %1168 = vrot.lane.b32.xlu1 %v4633_v31, %s2501_s20  ;;  %v4643_v31 = vpack.c.bf16 %v3184_v48, %v3145_v25  ;;  %v4645_v48 = vld [vmem:[#allocation21_spill] sm:$0xff] }
 0x161   :  { %v785_v13 = vpop.permute.xlu1 %784  ;;  %v769_v46 = vpop.permute.xlu0 %768 }
 0x162   :  { %2174 = vmatprep.subr.msk.bf16.mxu1 %vm800_vm1, %v785_v13  ;;  %v814_v40 = vsel %vm800_vm1, %v769_v46, 0  ;;  %v4644_v46 = vld [vmem:[#allocation23_spill] sm:$0xff] }
 0x163   :  { %1152 = vrot.lane.b32.xlu1 %v4634_v27, %s2501_s20  ;;  %2023 = vmatpush3.bf16.xpose.msra.mxu1 %v814_v40 }
 0x165   :  { %v787_v49 = vpop.permute.xlu1 %786  ;;  %v771_v34 = vpop.permute.xlu0 %770 }
 0x166   :  { %2175 = vmatprep.subr.msk.bf16.mxu1 %vm800_vm1, %v787_v49  ;;  %v817_v19 = vsel %vm800_vm1, %v771_v34, 0 }
 0x167   :  { %1170 = vrot.lane.b32.xlu1 %v4635_v11, %s2501_s20 }
 0x169   :  { %v789_v22 = vpop.permute.xlu1 %788 }
 0x16b   :  { %1154 = vrot.lane.b32.xlu1 %v4636_v60, %s2501_s20  ;;  %2025 = vmatpush3.bf16.xpose.msra.mxu1 %v817_v19 }
 0x16c   :  { %v773_v6 = vpop.permute.xlu0 %772  ;;  %2176 = vmatprep.subr.msk.bf16.mxu1 %vm800_vm1, %v789_v22 }
 0x16d   :  { %v791_v23 = vpop.permute.xlu1 %790  ;;  %v820_v42 = vsel %vm800_vm1, %v773_v6, 0 }
 0x16f   :  { %1172 = vrot.lane.b32.xlu1 %v4637_v41, %s2501_s20 }
 0x170   :  { %v775_v26 = vpop.permute.xlu0 %774 }
 0x171   :  { %v823_v10 = vsel %vm800_vm1, %v775_v26, 0 }
 0x173   :  { %1156 = vrot.lane.b32.xlu1 %v4638_v20, %s2501_s20  ;;  %2027 = vmatpush3.bf16.xpose.msra.mxu1 %v820_v42 }
 0x174   :  { %v777_v37 = vpop.permute.xlu0 %776  ;;  %2177 = vmatprep.subr.msk.bf16.mxu1 %vm800_vm1, %v791_v23 }
 0x175   :  { %v826_v11 = vsel %vm800_vm1, %v777_v37, 0  ;;  %v4646_v37 = vld [vmem:[#allocation22_spill] sm:$0xff] }
 0x177   :  { %1509 = vrot.lane.b32.xlu1 %v4639_v28, %s2502_s2 }
 0x178   :  { %v793_v32 = vpop.permute.xlu1 %792  ;;  %v779_v59 = vpop.permute.xlu0 %778 }
 0x179   :  { %v829_v28 = vsel %vm800_vm1, %v779_v59, 0 }
 0x17b   :  { %1507 = vrot.lane.b32.xlu1 %v4640_v50, %s2502_s2  ;;  %2029 = vmatpush3.bf16.xpose.msra.mxu1 %v823_v10  ;;  %v4647_v50 = vld [vmem:[#allocation24_spill] sm:$0xff] }
 0x17c   :  { %2178 = vmatprep.subr.msk.bf16.mxu1 %vm800_vm1, %v793_v32 }
 0x17d   :  { %v795_v54 = vpop.permute.xlu1 %794 }
 0x17f   :  { %1515 = vrot.lane.b32.xlu1 %v4641_v0, %s2502_s2 }
 0x180   :  { %v781_v7 = vpop.permute.xlu0 %780 }
 0x181   :  { %v797_v38 = vpop.permute.xlu1 %796 }
 0x183   :  { %1513 = vrot.lane.b32.xlu1 %v4642_v16, %s2502_s2  ;;  %2031 = vmatpush3.bf16.xpose.msra.mxu1 %v826_v11 }
 0x184   :  { %v783_v17 = vpop.permute.xlu0 %782  ;;  %2179 = vmatprep.subr.msk.bf16.mxu1 %vm800_vm1, %v795_v54 }
 0x185   :  { %v799_v2 = vpop.permute.xlu1 %798 }
 0x187   :  { %1511 = vrot.lane.b32.xlu1 %v4643_v31, %s2502_s2 }
 0x188   :  { %v3338_v27 = vpop.permute.xlu0 %2274 }
 0x189   :  { %v3335_v35 = vpop.permute.xlu1 %2279  ;;  %v2277_v5 = vunpack.i.h.bf16 %v3338_v27  ;;  %v2276_v13 = vunpack.i.l.bf16 %v3338_v27 }
 0x18a   :  { %v4471_v63 = vunpack.i.h.bf16 %v3335_v35  ;;  %v4470_v56 = vunpack.i.l.bf16 %v3335_v35 }
 0x18b   :  { %v705_v25 = vmul.f32 %v2277_v5, %v4644_v46  ;;  %v704_v40 = vmul.f32 %v2276_v13, %v4645_v48  ;;  %2033 = vmatpush3.bf16.xpose.msra.mxu1 %v829_v28 }
 0x18c   :  { %v689_v49 = vmul.f32 %v4471_v63, %v4644_v46  ;;  %v3356_v34 = vpop.permute.xlu0 %2284  ;;  %v688_v41 = vmul.f32 %v4470_v56, %v4645_v48  ;;  %2180 = vmatprep.subr.msk.bf16.mxu1 %vm800_vm1, %v797_v38  ;;  %v3514_v63 = vmul.f32 %v2277_v5, %v3017_v18  ;;  %v4652_v5 = vunpack.i.l.bf16 %v3335_v35 }
 0x18d   :  { %v3351_v60 = vpop.permute.xlu1 %2289  ;;  %v4468_v22 = vunpack.i.h.bf16 %v3356_v34  ;;  %v4462_v6 = vunpack.i.l.bf16 %v3356_v34  ;;  %v744_v19 = vpack.c.bf16 %v705_v25, %v704_v40 }
 0x18e   :  { %v4460_v23 = vunpack.i.h.bf16 %v3351_v60  ;;  %v4458_v32 = vunpack.i.l.bf16 %v3351_v60  ;;  %v736_v0 = vpack.c.bf16 %v689_v49, %v688_v41  ;;  %v832_v41 = vsel %vm800_vm1, %v781_v7, 0 }
 0x18f   :  { %1046 = vrot.lane.b32.xlu0 %v744_v19, %s2503_s9  ;;  %v707_v42 = vmul.f32 %v4468_v22, %v4646_v37  ;;  %v706_v54 = vmul.f32 %v4462_v6, %v4647_v50 }
 0x190   :  { %v3367_v26 = vpop.permute.xlu0 %2294  ;;  %v691_v59 = vmul.f32 %v4460_v23, %v4646_v37  ;;  %v690_v16 = vmul.f32 %v4458_v32, %v4647_v50 }
 0x191   :  { %v3364_v20 = vpop.permute.xlu1 %2299  ;;  %v745_v40 = vpack.c.bf16 %v707_v42, %v706_v54 }
 0x192   :  { %v737_v42 = vpack.c.bf16 %v691_v59, %v690_v16  ;;  %v835_v16 = vsel %vm800_vm1, %v783_v17, 0 }
 0x193   :  { %1030 = vrot.lane.b32.xlu0 %v736_v0, %s2503_s9  ;;  %v4648_v0 = vld [vmem:[#allocation26_spill] sm:$0xff]  ;;  %2035 = vmatpush3.bf16.xpose.msra.mxu1 %v832_v41 }
 0x194   :  { %v3382_v10 = vpop.permute.xlu0 %2304  ;;  %2181 = vmatprep.subr.msk.bf16.mxu1 %vm800_vm1, %v799_v2 }
 0x195   :  { %v3387_v31 = vpop.permute.xlu1 %2309  ;;  %v4453_v11 = vunpack.i.h.bf16 %v3382_v10  ;;  %v4452_v25 = vunpack.i.l.bf16 %v3382_v10 }
 0x196   :  { %v4450_v38 = vunpack.i.h.bf16 %v3387_v31  ;;  %v4451_v19 = vunpack.i.l.bf16 %v3387_v31 }
 0x197   :  { %1048 = vrot.lane.b32.xlu0 %v745_v40, %s2503_s9  ;;  %v711_v28 = vmul.f32 %v4453_v11, %v2902_v14  ;;  %v710_v52 = vmul.f32 %v4452_v25, %v4648_v0 }
 0x198   :  { %v3393_v49 = vpop.permute.xlu0 %2314  ;;  %v695_v7 = vmul.f32 %v4450_v38, %v2902_v14  ;;  %v694_v40 = vmul.f32 %v4451_v19, %v4648_v0 }
 0x199   :  { %v3408_v54 = vpop.permute.xlu1 %2319  ;;  %v4455_v9 = vunpack.i.h.bf16 %v3393_v49  ;;  %v4454_v3 = vunpack.i.l.bf16 %v3393_v49  ;;  %v747_v41 = vpack.c.bf16 %v711_v28, %v710_v52 }
 0x19a   :  { %v4456_v2 = vunpack.i.h.bf16 %v3408_v54  ;;  %v739_v52 = vpack.c.bf16 %v695_v7, %v694_v40  ;;  %v429_v7 = vpack.c.bf16 %v4646_v37, %v4647_v50 }
 0x19b   :  { %1032 = vrot.lane.b32.xlu0 %v737_v42, %s2503_s9  ;;  %v4457_v42 = vunpack.i.l.bf16 %v3408_v54  ;;  %v713_v38 = vmul.f32 %v4455_v9, %v4644_v46  ;;  %v712_v19 = vmul.f32 %v4454_v3, %v4645_v48  ;;  %2037 = vmatpush3.bf16.xpose.msra.mxu1 %v835_v16 }
 0x19c   :  { %v3415_v59 = vpop.permute.xlu0 %2324  ;;  %v697_v17 = vmul.f32 %v4456_v2, %v4644_v46  ;;  %v4649_v2 = vld [vmem:[#allocation25_spill] sm:$0xff] }
 0x19d   :  { %v3427_v28 = vpop.permute.xlu1 %2329  ;;  %v696_v25 = vmul.f32 %v4457_v42, %v4645_v48  ;;  %v4459_v11 = vunpack.i.h.bf16 %v3415_v59  ;;  %v4461_v3 = vunpack.i.l.bf16 %v3415_v59  ;;  %v748_v16 = vpack.c.bf16 %v713_v38, %v712_v19 }
 0x19e   :  { %v4463_v40 = vunpack.i.h.bf16 %v3427_v28 }
 0x19f   :  { %1052 = vrot.lane.b32.xlu0 %v747_v41, %s2503_s9  ;;  %v715_v42 = vmul.f32 %v4459_v11, %v4646_v37  ;;  %v714_v38 = vmul.f32 %v4461_v3, %v4647_v50  ;;  %v740_v19 = vpack.c.bf16 %v697_v17, %v696_v25  ;;  %v430_v25 = vpack.c.bf16 %v2915_v45, %v2893_v61 }
 0x1a0   :  { %v3433_v41 = vpop.permute.xlu0 %2334  ;;  %v699_v32 = vmul.f32 %v4463_v40, %v4646_v37 }
 0x1a1   :  { %v3445_v9 = vpop.permute.xlu1 %2339  ;;  %v749_v3 = vpack.c.bf16 %v715_v42, %v714_v38 }
 0x1a2   :  { %2039 = vmatmul.mubr.msk.bf16.vlgmr.msra.gmra.mrb[0].mxu1 %vm800_vm1, %v4649_v2  ;;  %v2342_v56 = vunpack.i.h.bf16 %v3445_v9 }
 0x1a3   :  { %1036 = vrot.lane.b32.xlu0 %v739_v52, %s2503_s9  ;;  %v4464_v52 = vunpack.i.l.bf16 %v3427_v28  ;;  %2040 = vmatprep.mubr.msk.bf16.mxu1 %vm800_vm1, %v429_v7 }
 0x1a5   :  { %v698_v2 = vmul.f32 %v4464_v52, %v4647_v50  ;;  %v3467_v6 = vpop.permute.xlu1 %2349 }
 0x1a6   :  { %v4469_v40 = vunpack.i.l.bf16 %v3467_v6 }
 0x1a7   :  { %1054 = vrot.lane.b32.xlu0 %v748_v16, %s2503_s9  ;;  %v3456_v16 = vpop.permute.xlu0 %2344  ;;  %v741_v17 = vpack.c.bf16 %v699_v32, %v698_v2  ;;  %v2296_v32 = vunpack.i.l.bf16 %v3367_v26 }
 0x1a8   :  { %v4466_v11 = vunpack.i.h.bf16 %v3456_v16  ;;  %v4465_v23 = vunpack.i.l.bf16 %v3456_v16  ;;  %v702_v38 = vmul.f32 %v4469_v40, %v4648_v0  ;;  %v2336_v40 = vunpack.i.l.bf16 %v3433_v41 }
 0x1aa   :  { %2041 = vmatmul.mubr.msk.bf16.gmra.mrb[4].mxu1 %vm800_vm1, %v429_v7  ;;  %v719_v52 = vmul.f32 %v4466_v11, %v2902_v14  ;;  %v718_v42 = vmul.f32 %v4465_v23, %v4648_v0  ;;  %v431_v23 = vpack.c.bf16 %v2902_v14, %v4648_v0  ;;  %v2301_v11 = vunpack.i.l.bf16 %v3364_v20 }
 0x1ab   :  { %1038 = vrot.lane.b32.xlu0 %v740_v19, %s2503_s9  ;;  %v4467_v19 = vunpack.i.h.bf16 %v3467_v6  ;;  %2042 = vmatprep.mubr.msk.bf16.mxu1 %vm800_vm1, %v430_v25 }
 0x1ac   :  { %v751_v2 = vpack.c.bf16 %v719_v52, %v718_v42  ;;  %v692_v42 = vmul.f32 %v2301_v11, %v2893_v61 }
 0x1ad   :  { %v703_v7 = vmul.f32 %v4467_v19, %v2902_v14  ;;  %v708_v19 = vmul.f32 %v2296_v32, %v2893_v61 }
 0x1af   :  { %1056 = vrot.lane.b32.xlu0 %v749_v3, %s2503_s9  ;;  %v2297_v3 = vunpack.i.h.bf16 %v3367_v26  ;;  %v743_v22 = vpack.c.bf16 %v703_v7, %v702_v38  ;;  %v2341_v7 = vunpack.i.l.bf16 %v3445_v9  ;;  %v716_v38 = vmul.f32 %v2336_v40, %v2893_v61 }
 0x1b1   :  { %v709_v26 = vmul.f32 %v2297_v3, %v2915_v45  ;;  %v700_v9 = vmul.f32 %v2341_v7, %v2893_v61 }
 0x1b2   :  { %2043 = vmatmul.mubr.msk.bf16.gmra.mrb[8].mxu1 %vm800_vm1, %v430_v25 }
 0x1b3   :  { %1040 = vrot.lane.b32.xlu0 %v741_v17, %s2503_s9  ;;  %v2302_v17 = vunpack.i.h.bf16 %v3364_v20  ;;  %2044 = vmatprep.mubr.msk.bf16.mxu1 %vm800_vm1, %v431_v23  ;;  %v746_v20 = vpack.c.bf16 %v709_v26, %v708_v19 }
 0x1b5   :  { %v693_v52 = vmul.f32 %v2302_v17, %v2915_v45  ;;  %v3613_v27 = vmul.f32 %v2302_v17, %v3140_v1 }
 0x1b7   :  { %1060 = vrot.lane.b32.xlu0 %v751_v2, %s2503_s9  ;;  %v2337_v2 = vunpack.i.h.bf16 %v3433_v41  ;;  %v738_v25 = vpack.c.bf16 %v693_v52, %v692_v42  ;;  %v4650_v41 = vld [vmem:[#allocation31_spill] sm:$0xff]  ;;  %v4651_v52 = vunpack.i.h.bf16 %v3335_v35 }
 0x1b8   :  { %v3519_v19 = vmul.f32 %v2276_v13, %v4650_v41 }
 0x1b9   :  { %v3527_v42 = vmul.f32 %v4651_v52, %v3017_v18 }
 0x1ba   :  { %2045 = vmatmul.mubr.msk.bf16.gmra.mrb[12].mxu1 %vm800_vm1, %v431_v23  ;;  %v701_v23 = vmul.f32 %v2342_v56, %v2915_v45 }
 0x1bb   :  { %1044 = vrot.lane.b32.xlu0 %v743_v22, %s2503_s9  ;;  %v717_v22 = vmul.f32 %v2337_v2, %v2915_v45  ;;  %v3663_v45 = vmul.f32 %v2342_v56, %v3140_v1  ;;  %v4681_v56 = vunpack.i.h.bf16 %v3456_v16 }
 0x1bc   :  { %v742_v13 = vpack.c.bf16 %v701_v23, %v700_v9  ;;  %v4656_v23 = vunpack.i.l.bf16 %v3351_v60 }
 0x1bd   :  { %v750_v26 = vpack.c.bf16 %v717_v22, %v716_v38  ;;  %v4654_v38 = vunpack.i.l.bf16 %v3356_v34  ;;  %4675 = vst [vmem:[#allocation18_spill] sm:$0xff] %v3663_v45 }
 0x1be   :  { %v3558_v9 = vmul.f32 %v4656_v23, %v2986_v15 }
 0x1bf   :  { %1050 = vrot.lane.b32.xlu0 %v746_v20, %s2503_s9  ;;  %v3532_v20 = vmul.f32 %v4652_v5, %v4650_v41  ;;  %v3545_v52 = vmul.f32 %v4654_v38, %v2986_v15  ;;  %v4655_v5 = vunpack.i.h.bf16 %v3351_v60  ;;  %v4657_v38 = vunpack.i.h.bf16 %v3408_v54 }
 0x1c0   :  { %v4659_v60 = vunpack.i.h.bf16 %v3393_v49 }
 0x1c2   :  { %v3579_v23 = vmul.f32 %v4659_v60, %v3017_v18  ;;  %v4663_v60 = vunpack.i.h.bf16 %v3415_v59 }
 0x1c3   :  { %1034 = vrot.lane.b32.xlu0 %v738_v25, %s2503_s9  ;;  %v4653_v25 = vunpack.i.h.bf16 %v3356_v34  ;;  %v3564_v34 = vmul.f32 %v2296_v32, %v3113_v21 }
 0x1c4   :  { %v3601_v0 = vmul.f32 %v4663_v60, %v2998_v24 }
 0x1c5   :  { %v3540_v22 = vmul.f32 %v4653_v25, %v2998_v24  ;;  %v3561_v25 = vmul.f32 %v2297_v3, %v3140_v1  ;;  %v4660_v3 = vunpack.i.l.bf16 %v3393_v49  ;;  %v4664_v49 = vunpack.i.l.bf16 %v3415_v59 }
 0x1c6   :  { %v4667_v59 = vunpack.i.l.bf16 %v3382_v10 }
 0x1c7   :  { %1058 = vrot.lane.b32.xlu0 %v750_v26, %s2503_s9  ;;  %v3553_v26 = vmul.f32 %v4655_v5, %v2998_v24  ;;  %v4658_v5 = vunpack.i.l.bf16 %v3408_v54  ;;  %v3584_v32 = vmul.f32 %v4660_v3, %v4650_v41  ;;  %v4662_v54 = vunpack.i.l.bf16 %v3427_v28 }
 0x1c8   :  { %v3606_v3 = vmul.f32 %v4664_v49, %v2986_v15  ;;  %v3626_v49 = vmul.f32 %v4667_v59, %v3102_v33 }
 0x1c9   :  { %v3574_v35 = vmul.f32 %v4658_v5, %v4650_v41  ;;  %v3596_v5 = vmul.f32 %v4662_v54, %v2986_v15  ;;  %v4666_v54 = vunpack.i.h.bf16 %v3382_v10  ;;  %v4673_v10 = vld [vmem:[#allocation36_spill] sm:$0xff] }
 0x1cb   :  { %1042 = vrot.lane.b32.xlu0 %v742_v13, %s2503_s9  ;;  %v3569_v13 = vmul.f32 %v4657_v38, %v3017_v18  ;;  %v4661_v38 = vunpack.i.h.bf16 %v3427_v28  ;;  %v3616_v28 = vmul.f32 %v2301_v11, %v3113_v21  ;;  %v3621_v60 = vmul.f32 %v4666_v54, %v3124_v39 }
 0x1cc   :  { %v4671_v11 = vunpack.i.l.bf16 %v3387_v31 }
 0x1cd   :  { %v3591_v14 = vmul.f32 %v4661_v38, %v2998_v24  ;;  %v4665_v38 = vpack.c.bf16 %v3042_v58, %v3009_v29  ;;  %v4670_v58 = vunpack.i.h.bf16 %v3387_v31  ;;  %v3669_v31 = vmul.f32 %v2337_v2, %v3140_v1 }
 0x1ce   :  { %v3652_v17 = vmul.f32 %v4671_v11, %v3102_v33  ;;  %v3672_v11 = vmul.f32 %v2336_v40, %v3113_v21  ;;  %v4683_v2 = vunpack.i.l.bf16 %v3456_v16 }
 0x1cf   :  { %1493 = vrot.lane.b32.xlu0 %v4665_v38, %s2502_s2  ;;  %v4668_v38 = vld [vmem:[#allocation35_spill] sm:$0xff]  ;;  %v3647_v29 = vmul.f32 %v4670_v58, %v3124_v39  ;;  %v3666_v58 = vmul.f32 %v2341_v7, %v3113_v21  ;;  %v3687_v7 = vmul.f32 %v4681_v56, %v3124_v39 }
 0x1d0   :  { %v4669_v54 = vpack.c.bf16 %v3068_v30, %v4668_v38  ;;  %v4677_v38 = vunpack.i.h.bf16 %v3467_v6  ;;  %v3692_v40 = vmul.f32 %v4683_v2, %v3102_v33  ;;  %v4686_v2 = vpack.c.bf16 %v3189_v8, %v3150_v53 }
 0x1d1   :  { %4676 = vst [vmem:[#allocation20_spill] sm:$0xff] %v3666_v58  ;;  %4682 = vst [vmem:[#allocation3_spill] sm:$0xff] %v3687_v7 }
 0x1d2   :  { %v3677_v30 = vmul.f32 %v4677_v38, %v3124_v39  ;;  %4684 = vst [vmem:[#allocation4_spill] sm:$0xff] %v3692_v40  ;;  %v4685_v38 = vpack.c.bf16 %v3165_v12, %v3135_v62 }
 0x1d3   :  { %1491 = vrot.lane.b32.xlu0 %v4669_v54, %s2502_s2  ;;  %v4672_v54 = vld [vmem:[#allocation38_spill] sm:$0xff] }
 0x1d4   :  { %v4674_v59 = vpack.c.bf16 %v4672_v54, %v4673_v10  ;;  %4678 = vst [vmem:[#allocation19_spill] sm:$0xff] %v3677_v30  ;;  %v4679_v10 = vunpack.i.l.bf16 %v3467_v6  ;;  %v3712_v54 = vpop.permute.xlu1 %1158 }
 0x1d7   :  { %1499 = vrot.lane.b32.xlu0 %v4674_v59, %s2502_s2  ;;  %v3682_v59 = vmul.f32 %v4679_v10, %v3102_v33 }
 0x1d8   :  { %v3714_v62 = vpop.permute.xlu1 %1142 }
 0x1d9   :  { %4680 = vst [vmem:[#allocation5_spill] sm:$0xff] %v3682_v59 }
 0x1db   :  { %1497 = vrot.lane.b32.xlu0 %v4685_v38, %s2502_s2 }
 0x1dc   :  { %v3716_v12 = vpop.permute.xlu1 %1160 }
 0x1dd   :  { %4687 = vst [vmem:[#allocation2_spill] sm:$0xff] %v3716_v12 }
 0x1df   :  { %1495 = vrot.lane.b32.xlu0 %v4686_v2, %s2502_s2 }
 0x1e0   :  { %v3718_v38 = vpop.permute.xlu1 %1144 }
 0x1e1   :  { %4688 = vst [vmem:[#allocation6_spill] sm:$0xff] %v3718_v38 }
 0x1e4   :  { %v3720_v10 = vpop.permute.xlu1 %1162 }
 0x1e5   :  { %4689 = vst [vmem:[#allocation7_spill] sm:$0xff] %v3720_v10 }
 0x1e8   :  { %v3724_v16 = vpop.permute.xlu1 %1146 }
 0x1e9   :  { %4690 = vst [vmem:[#allocation8_spill] sm:$0xff] %v3724_v16 }
 0x1ec   :  { %v3728_v8 = vpop.permute.xlu1 %1164 }
 0x1ed   :  { %4691 = vst [vmem:[#allocation9_spill] sm:$0xff] %v3728_v8 }
 0x201   :  { %v1047_v6 = vpop.permute.xlu0 %1046 }
 0x202   :  { %v1208_v56 = vsel %vm800_vm1, %v1047_v6, %v3712_v54  ;;  %v3734_v6 = vpop.permute.xlu1 %1148 }
 0x203   :  { %2046 = vmatprep.subr.bf16.mxu0 %v1208_v56  ;;  %4692 = vst [vmem:[#allocation10_spill] sm:$0xff] %v3734_v6 }
 0x205   :  { %v1031_v61 = vpop.permute.xlu0 %1030 }
 0x206   :  { %v1176_v53 = vsel %vm800_vm1, %v1031_v61, %v3714_v62  ;;  %v3736_v48 = vpop.permute.xlu1 %1166 }
 0x207   :  { %2047 = vmatpush3.bf16.msra.mxu0 %v1176_v53  ;;  %4693 = vst [vmem:[#allocation11_spill] sm:$0xff] %v3736_v48 }
 0x209   :  { %v1049_v2 = vpop.permute.xlu0 %1048 }
 0x20a   :  { %v1212_v37 = vsel %vm800_vm1, %v1049_v2, %v3716_v12  ;;  %v3738_v53 = vpop.permute.xlu1 %1150 }
 0x20b   :  { %2048 = vmatprep.subr.bf16.mxu0 %v1212_v37  ;;  %4694 = vst [vmem:[#allocation12_spill] sm:$0xff] %v3738_v53 }
 0x20d   :  { %v1033_v50 = vpop.permute.xlu0 %1032 }
 0x20e   :  { %v1180_v46 = vsel %vm800_vm1, %v1033_v50, %v3718_v38  ;;  %v3740_v59 = vpop.permute.xlu1 %1168  ;;  %v4705_v38 = vld [vmem:[#allocation39_spill] sm:$0xff] }
 0x20f   :  { %2049 = vmatpush3.bf16.msra.mxu0 %v1180_v46  ;;  %4695 = vst [vmem:[#allocation13_spill] sm:$0xff] %v3740_v59 }
 0x211   :  { %v1053_v56 = vpop.permute.xlu0 %1052 }
 0x212   :  { %v3742_v37 = vpop.permute.xlu1 %1152  ;;  %v1220_v24 = vsel %vm800_vm1, %v1053_v56, %v3728_v8 }
 0x213   :  { %4696 = vst [vmem:[#allocation14_spill] sm:$0xff] %v3742_v37 }
 0x215   :  { %v1037_v58 = vpop.permute.xlu0 %1036 }
 0x216   :  { %v3744_v7 = vpop.permute.xlu1 %1170  ;;  %v1188_v18 = vsel %vm800_vm1, %v1037_v58, %v3734_v6 }
 0x217   :  { %4697 = vst [vmem:[#allocation15_spill] sm:$0xff] %v3744_v7 }
 0x219   :  { %v1055_v61 = vpop.permute.xlu0 %1054 }
 0x21a   :  { %v3748_v33 = vpop.permute.xlu1 %1154 }
 0x21b   :  { %4698 = vst [vmem:[#allocation16_spill] sm:$0xff] %v3748_v33 }
 0x21d   :  { %v1039_v45 = vpop.permute.xlu0 %1038 }
 0x21e   :  { %v3754_v15 = vpop.permute.xlu1 %1172  ;;  %v1192_v41 = vsel %vm800_vm1, %v1039_v45, %v3738_v53 }
 0x21f   :  { %4699 = vst [vmem:[#allocation17_spill] sm:$0xff] %v3754_v15 }
 0x221   :  { %v1057_v30 = vpop.permute.xlu0 %1056 }
 0x225   :  { %v1041_v2 = vpop.permute.xlu0 %1040 }
 0x229   :  { %v1061_v40 = vpop.permute.xlu0 %1060 }
 0x22d   :  { %v1045_v50 = vpop.permute.xlu0 %1044 }
 0x231   :  { %v1051_v39 = vpop.permute.xlu0 %1050 }
 0x232   :  { %v1216_v46 = vsel %vm800_vm1, %v1051_v39, %v3720_v10  ;;  %v1224_v39 = vsel %vm800_vm1, %v1055_v61, %v3736_v48  ;;  %v4704_v10 = vld [vmem:[#allocation41_spill] sm:$0xff] }
 0x233   :  { %2050 = vmatprep.subr.bf16.mxu0 %v1216_v46  ;;  %v4706_v12 = vpack.c.bf16 %v4704_v10, %v4705_v38 }
 0x235   :  { %v1035_v1 = vpop.permute.xlu0 %1034 }
 0x236   :  { %v1184_v21 = vsel %vm800_vm1, %v1035_v1, %v3724_v16  ;;  %v3762_v1 = vpop.permute.xlu1 %1156 }
 0x237   :  { %2051 = vmatpush3.bf16.msra.mxu0 %v1184_v21  ;;  %4700 = vst [vmem:[#allocation25_spill] sm:$0xff] %v3762_v1  ;;  %v1196_v21 = vsel %vm800_vm1, %v1041_v2, %v3742_v37 }
 0x238   :  { %2052 = vmatprep.subr.bf16.mxu0 %v1220_v24  ;;  %v1228_v24 = vsel %vm800_vm1, %v1057_v30, %v3740_v59  ;;  %v1204_v30 = vsel %vm800_vm1, %v1045_v50, %v3762_v1 }
 0x239   :  { %v1059_v46 = vpop.permute.xlu0 %1058 }
 0x23a   :  { %v3770_v56 = vpop.permute.xlu1 %1509 }
 0x23b   :  { %2053 = vmatpush3.bf16.msra.mxu0 %v1188_v18  ;;  %v1232_v18 = vsel %vm800_vm1, %v1059_v46, %v3744_v7  ;;  %v4701_v7 = vld [vmem:[#allocation37_spill] sm:$0xff] }
 0x23c   :  { %2054 = vmatprep.subr.bf16.mxu0 %v1224_v39 }
 0x23d   :  { %v1043_v58 = vpop.permute.xlu0 %1042 }
 0x23e   :  { %v1200_v45 = vsel %vm800_vm1, %v1043_v58, %v3748_v33  ;;  %v1508_v61 = vpop.permute.xlu1 %1507 }
 0x23f   :  { %2055 = vmatpush3.bf16.msra.mxu0 %v1192_v41  ;;  %v1236_v41 = vsel %vm800_vm1, %v1061_v40, %v3754_v15 }
 0x240   :  { %2056 = vmatprep.subr.bf16.mxu0 %v1228_v24 }
 0x243   :  { %2057 = vmatpush3.bf16.msra.mxu0 %v1196_v21 }
 0x244   :  { %2058 = vmatprep.subr.bf16.mxu0 %v1232_v18 }
 0x247   :  { %2059 = vmatpush3.bf16.msra.mxu0 %v1200_v45 }
 0x248   :  { %2060 = vmatprep.subr.bf16.mxu0 %v1236_v41 }
 0x24b   :  { %2061 = vmatpush3.bf16.msra.mxu0 %v1204_v30 }
 0x24c   :  { %2182 = vmatprep.subr.msk.bf16.mxu0 %vm800_vm1, %v1508_v61 }
 0x275   :  { %v895_v2 = vpop.f32.mrb[0].mxu1 }
 0x276   :  { %v897_v39 = vpop.f32.mrb[1].mxu1 }
 0x277   :  { %v3779_v46 = vpop.f32.mrb[2].mxu1  ;;  %v934_v24 = vmax.f32 %v895_v2, %v897_v39 }
 0x278   :  { %v3781_v21 = vpop.f32.mrb[3].mxu1 }
 0x279   :  { %935 = vmax.xlane.f32.xlu0 %v934_v24  ;;  %v937_v58 = vmax.f32 %v3779_v46, %v3781_v21 }
 0x27b   :  { %938 = vmax.xlane.f32.xlu1 %v937_v58 }
 0x27d   :  { %v3785_v40 = vpop.f32.mrb[4].mxu1 }
 0x27e   :  { %v3787_v18 = vpop.f32.mrb[5].mxu1 }
 0x27f   :  { %v3789_v50 = vpop.f32.mrb[6].mxu1  ;;  %v940_v45 = vmax.f32 %v3785_v40, %v3787_v18 }
 0x280   :  { %v3793_v41 = vpop.f32.mrb[7].mxu1 }
 0x281   :  { %941 = vmax.xlane.f32.xlu0 %v940_v45  ;;  %v943_v30 = vmax.f32 %v3789_v50, %v3793_v41  ;;  %v4702_v45 = vld [vmem:[#allocation33_spill] sm:$0xff] }
 0x282   :  { %v4703_v37 = vpack.c.bf16 %v4701_v7, %v4702_v45  ;;  %v4707_v7 = vpack.c.bf16 %v3194_v44, %v3155_v55  ;;  %v4709_v45 = vpack.c.bf16 %v3209_v51, %v3175_v43  ;;  %v4711_v55 = vpack.c.bf16 %v3527_v42, %v3532_v20  ;;  %v1516_v42 = vpop.permute.xlu1 %1515 }
 0x283   :  { %v4713_v43 = vpack.c.bf16 %v3613_v27, %v3616_v28  ;;  %v4714_v44 = vpack.c.bf16 %v3579_v23, %v3584_v32  ;;  %v4715_v51 = vpack.c.bf16 %v3569_v13, %v3574_v35  ;;  %v4717_v20 = vpack.c.bf16 %v3232_v47, %v3214_v36 }
 0x284   :  { %v4718_v35 = vpack.c.bf16 %v3540_v22, %v3545_v52  ;;  %v4719_v13 = vpack.c.bf16 %v3553_v26, %v3558_v9  ;;  %v4720_v47 = vpack.c.bf16 %v3621_v60, %v3626_v49  ;;  %v4721_v26 = vpack.c.bf16 %v3647_v29, %v3652_v17 }
 0x285   :  { %v3797_v61 = vpop.f32.mrb[8].mxu1  ;;  %v4722_v60 = vpack.c.bf16 %v3601_v0, %v3606_v3  ;;  %v4723_v49 = vpack.c.bf16 %v3591_v14, %v3596_v5 }
 0x286   :  { %v3799_v24 = vpop.f32.mrb[9].mxu1 }
 0x287   :  { %v3801_v58 = vpop.f32.mrb[10].mxu1  ;;  %v946_v1 = vmax.f32 %v3797_v61, %v3799_v24 }
 0x288   :  { %v3805_v15 = vpop.f32.mrb[11].mxu1 }
 0x289   :  { %v949_v33 = vmax.f32 %v3801_v58, %v3805_v15 }
 0x28c   :  { %1517 = vrot.lane.b32.xlu1 %v4703_v37, %s2502_s2  ;;  %v4708_v37 = vpack.c.bf16 %v3199_v4, %v3170_v57  ;;  %v4712_v57 = vpack.c.bf16 %v3561_v25, %v3564_v34  ;;  %v1494_v4 = vpop.permute.xlu0 %1493  ;;  %v1514_v25 = vpop.permute.xlu1 %1513 }
 0x28d   :  { %v3813_v59 = vpop.f32.mrb[12].mxu1  ;;  %v1539_v0 = vsel %vm800_vm1, %v1494_v4, 0 }
 0x28e   :  { %v3815_v53 = vpop.f32.mrb[13].mxu1 }
 0x28f   :  { %v952_v48 = vmax.f32 %v3813_v59, %v3815_v53  ;;  %v3819_v6 = vpop.f32.mrb[14].mxu1 }
 0x290   :  { %v3821_v8 = vpop.f32.mrb[15].mxu1  ;;  %v1512_v23 = vpop.permute.xlu1 %1511 }
 0x291   :  { %v955_v16 = vmax.f32 %v3819_v6, %v3821_v8 }
 0x297   :  { %1501 = vrot.lane.b32.xlu0 %v4706_v12, %s2502_s2 }
 0x2b0   :  { %944 = vmax.xlane.f32.xlu1 %v943_v30 }
 0x2b4   :  { %950 = vmax.xlane.f32.xlu1 %v949_v33  ;;  %v4710_v33 = vpack.c.bf16 %v3514_v63, %v3519_v19  ;;  %v1492_v63 = vpop.permute.xlu0 %1491 }
 0x2b6   :  { %947 = vmax.xlane.f32.xlu0 %v946_v1 }
 0x2b8   :  { %v1500_v19 = vpop.permute.xlu0 %1499 }
 0x2b9   :  { %v1548_v30 = vsel %vm800_vm1, %v1500_v19, 0 }
 0x2ba   :  { %953 = vmax.xlane.f32.xlu0 %v952_v48  ;;  %v4716_v48 = vpack.c.bf16 %v3669_v31, %v3672_v11 }
 0x2bc   :  { %v1498_v27 = vpop.permute.xlu0 %1497 }
 0x2bd   :  { %v1545_v5 = vsel %vm800_vm1, %v1498_v27, 0 }
 0x2c0   :  { %v1496_v34 = vpop.permute.xlu0 %1495 }
 0x2c1   :  { %v1542_v14 = vsel %vm800_vm1, %v1496_v34, 0 }
 0x2c5   :  { %1519 = vrot.lane.b32.xlu1 %v4707_v7, %s2502_s2 }
 0x2d0   :  { %1503 = vrot.lane.b32.xlu0 %v4708_v37, %s2502_s2 }
 0x2d4   :  { %1505 = vrot.lane.b32.xlu0 %v4709_v45, %s2502_s2 }
 0x2d8   :  { %1768 = vrot.lane.b32.xlu0 %v4710_v33, %s2503_s9 }
 0x2dc   :  { %1752 = vrot.lane.b32.xlu0 %v4711_v55, %s2503_s9 }
 0x2e0   :  { %1772 = vrot.lane.b32.xlu0 %v4712_v57, %s2503_s9 }
 0x2e4   :  { %1756 = vrot.lane.b32.xlu0 %v4713_v43, %s2503_s9 }
 0x2e8   :  { %1776 = vrot.lane.b32.xlu0 %v4714_v44, %s2503_s9 }
 0x2e9   :  { %956 = vmax.xlane.f32.xlu1 %v955_v16 }
 0x2ec   :  { %1760 = vrot.lane.b32.xlu0 %v4715_v51, %s2503_s9 }
 0x2f0   :  { %1780 = vrot.lane.b32.xlu0 %v4716_v48, %s2503_s9 }
 0x2fa   :  { %1521 = vrot.lane.b32.xlu1 %v4717_v20, %s2502_s2 }
 0x2fe   :  { %1770 = vrot.lane.b32.xlu1 %v4718_v35, %s2503_s9 }
 0x302   :  { %1754 = vrot.lane.b32.xlu1 %v4719_v13, %s2503_s9 }
 0x306   :  { %v936_v32 = vpop.xlane.xlu0 %935  ;;  %1774 = vrot.lane.b32.xlu1 %v4720_v47, %s2503_s9 }
 0x307   :  { %v958_v36 = vsub.f32 %v895_v2, %v936_v32  ;;  %v959_v28 = vsub.f32 %v897_v39, %v936_v32  ;;  %v1536_v39 = vsel %vm800_vm1, %v1492_v63, 0 }
 0x308   :  { %v939_v31 = vpop.xlane.xlu1 %938 }
 0x309   :  { %v974_v11 = vmul.f32 1.442695, %v958_v36  ;;  %v976_v10 = vmul.f32 1.442695, %v959_v28  ;;  %v960_v22 = vsub.f32 %v3779_v46, %v939_v31  ;;  %v961_v52 = vsub.f32 %v3781_v21, %v939_v31 }
 0x30a   :  { %1758 = vrot.lane.b32.xlu1 %v4721_v26, %s2503_s9 }
 0x30b   :  { %2389 = vpow2.f32 %v974_v11  ;;  %v978_v9 = vmul.f32 1.442695, %v960_v22  ;;  %v980_v16 = vmul.f32 1.442695, %v961_v52 }
 0x30c   :  { %2391 = vpow2.f32 %v976_v10  ;;  %v1518_v21 = vpop.permute.xlu1 %1517 }
 0x30d   :  { %2393 = vpow2.f32 %v978_v9 }
 0x30e   :  { %2395 = vpow2.f32 %v980_v16  ;;  %1778 = vrot.lane.b32.xlu1 %v4722_v60, %s2503_s9  ;;  %v942_v3 = vpop.xlane.xlu0 %941 }
 0x30f   :  { %v962_v46 = vsub.f32 %v3785_v40, %v942_v3 }
 0x311   :  { %v982_v7 = vmul.f32 1.442695, %v962_v46 }
 0x312   :  { %1762 = vrot.lane.b32.xlu1 %v4723_v49, %s2503_s9  ;;  %v1502_v57 = vpop.permute.xlu0 %1501 }
 0x313   :  { %2397 = vpow2.f32 %v982_v7  ;;  %v1551_v51 = vsel %vm800_vm1, %v1502_v57, 0 }
 0x315   :  { %v2390_v12 = vpop.eup %2389 }
 0x316   :  { %v2392_v38 = vpop.eup %2391 }
 0x317   :  { %v2394_v29 = vpop.eup %2393 }
 0x318   :  { %v2396_v17 = vpop.eup %2395  ;;  %v1006_v1 = vpack.c.bf16 %v2394_v29, %v2390_v12 }
 0x319   :  { %v1007_v2 = vpack.c.bf16 %v2396_v17, %v2392_v38 }
 0x31b   :  { %1270 = vmatprep.mubr.bf16.mxu0 %v1007_v2 }
 0x31c   :  { %1271 = vmatmul.mubr.bf16.vlgmr.msra.gmra.mrb[16].mxu0 %v1006_v1 }
 0x31d   :  { %2087 = vmatpush3.bf16.xpose.msra.mxu0 %v1536_v39 }
 0x31e   :  { %2183 = vmatprep.subr.msk.bf16.mxu0 %vm800_vm1, %v3770_v56  ;;  %v963_v56 = vsub.f32 %v3787_v18, %v942_v3 }
 0x320   :  { %v984_v37 = vmul.f32 1.442695, %v963_v56 }
 0x322   :  { %2399 = vpow2.f32 %v984_v37 }
 0x325   :  { %2089 = vmatpush3.bf16.xpose.msra.mxu0 %v1539_v0  ;;  %v4724_v0 = vld [vmem:[#allocation2_spill] sm:$0xff] }
 0x326   :  { %2184 = vmatprep.subr.msk.bf16.mxu0 %vm800_vm1, %v1512_v23 }
 0x32d   :  { %2091 = vmatpush3.bf16.xpose.msra.mxu0 %v1542_v14 }
 0x32e   :  { %2185 = vmatprep.subr.msk.bf16.mxu0 %vm800_vm1, %v1514_v25 }
 0x335   :  { %2093 = vmatpush3.bf16.xpose.msra.mxu0 %v1545_v5  ;;  %v4725_v5 = vld [vmem:[#allocation6_spill] sm:$0xff] }
 0x336   :  { %2186 = vmatprep.subr.msk.bf16.mxu0 %vm800_vm1, %v1516_v42 }
 0x33d   :  { %2095 = vmatpush3.bf16.xpose.msra.mxu0 %v1548_v30  ;;  %v945_v45 = vpop.xlane.xlu1 %944 }
 0x33e   :  { %2187 = vmatprep.subr.msk.bf16.mxu0 %vm800_vm1, %v1518_v21  ;;  %v964_v33 = vsub.f32 %v3789_v50, %v945_v45  ;;  %v965_v55 = vsub.f32 %v3793_v41, %v945_v45  ;;  %v4726_v21 = vld [vmem:[#allocation7_spill] sm:$0xff] }
 0x340   :  { %v986_v43 = vmul.f32 1.442695, %v964_v33  ;;  %v988_v44 = vmul.f32 1.442695, %v965_v55  ;;  %v4727_v55 = vld [vmem:[#allocation8_spill] sm:$0xff] }
 0x341   :  { %v951_v40 = vpop.xlane.xlu1 %950 }
 0x342   :  { %2401 = vpow2.f32 %v986_v43  ;;  %v968_v18 = vsub.f32 %v3801_v58, %v951_v40  ;;  %v969_v4 = vsub.f32 %v3805_v15, %v951_v40  ;;  %v2398_v15 = vpop.eup %2397 }
 0x343   :  { %2403 = vpow2.f32 %v988_v44  ;;  %v948_v63 = vpop.xlane.xlu0 %947  ;;  %v2400_v25 = vpop.eup %2399  ;;  %v4728_v44 = vld [vmem:[#allocation9_spill] sm:$0xff] }
 0x344   :  { %v994_v48 = vmul.f32 1.442695, %v968_v18  ;;  %v996_v19 = vmul.f32 1.442695, %v969_v4  ;;  %v966_v50 = vsub.f32 %v3797_v61, %v948_v63  ;;  %v967_v41 = vsub.f32 %v3799_v24, %v948_v63  ;;  %v4729_v18 = vld [vmem:[#allocation31_spill] sm:$0xff]  ;;  %v4730_v4 = vld [vmem:[#allocation34_spill] sm:$0xff] }
 0x345   :  { %2097 = vmatpush3.bf16.xpose.msra.mxu0 %v1551_v51  ;;  %v1520_v42 = vpop.permute.xlu1 %1519  ;;  %v1375_v51 = vpack.c.bf16 %v4730_v4, %v4729_v18 }
 0x346   :  { %2405 = vpow2.f32 %v994_v48  ;;  %v990_v20 = vmul.f32 1.442695, %v966_v50  ;;  %v992_v27 = vmul.f32 1.442695, %v967_v41  ;;  %2188 = vmatprep.subr.msk.bf16.mxu0 %vm800_vm1, %v1520_v42  ;;  %v4732_v41 = vld [vmem:[#allocation11_spill] sm:$0xff] }
 0x347   :  { %2407 = vpow2.f32 %v996_v19  ;;  %v954_v58 = vpop.xlane.xlu0 %953  ;;  %v4731_v19 = vld [vmem:[#allocation10_spill] sm:$0xff] }
 0x348   :  { %2409 = vpow2.f32 %v990_v20  ;;  %v970_v16 = vsub.f32 %v3813_v59, %v954_v58  ;;  %v971_v60 = vsub.f32 %v3815_v53, %v954_v58 }
 0x349   :  { %2411 = vpow2.f32 %v992_v27  ;;  %v4733_v27 = vld [vmem:[#allocation12_spill] sm:$0xff] }
 0x34a   :  { %v998_v49 = vmul.f32 1.442695, %v970_v16  ;;  %v1000_v12 = vmul.f32 1.442695, %v971_v60 }
 0x34b   :  { %v1504_v35 = vpop.permute.xlu0 %1503 }
 0x34c   :  { %v2402_v34 = vpop.eup %2401  ;;  %v1554_v13 = vsel %vm800_vm1, %v1504_v35, 0  ;;  %2413 = vpow2.f32 %v998_v49 }
 0x34d   :  { %v2404_v61 = vpop.eup %2403  ;;  %2099 = vmatpush3.bf16.xpose.msra.mxu0 %v1554_v13  ;;  %v1008_v24 = vpack.c.bf16 %v2402_v34, %v2398_v15  ;;  %2415 = vpow2.f32 %v1000_v12  ;;  %v4734_v15 = vld [vmem:[#allocation13_spill] sm:$0xff]  ;;  %v4735_v34 = vld [vmem:[#allocation30_spill] sm:$0xff]  ;;  %v4736_v13 = vld [vmem:[#allocation32_spill] sm:$0xff] }
 0x34e   :  { %v1009_v23 = vpack.c.bf16 %v2404_v61, %v2400_v25  ;;  %v1376_v61 = vpack.c.bf16 %v4736_v13, %v4735_v34 }
 0x34f   :  { %v1506_v32 = vpop.permute.xlu0 %1505 }
 0x350   :  { %v2406_v47 = vpop.eup %2405  ;;  %1278 = vmatprep.mubr.bf16.mxu0 %v1009_v23  ;;  %v4737_v23 = vld [vmem:[#allocation14_spill] sm:$0xff] }
 0x351   :  { %v2408_v36 = vpop.eup %2407  ;;  %1279 = vmatmul.mubr.bf16.gmra.mrb[20].mxu0 %v1008_v24 }
 0x352   :  { %v2410_v28 = vpop.eup %2409 }
 0x353   :  { %v2412_v31 = vpop.eup %2411  ;;  %v1769_v11 = vpop.permute.xlu0 %1768  ;;  %v1010_v10 = vpack.c.bf16 %v2406_v47, %v2410_v28  ;;  %v4738_v47 = vld [vmem:[#allocation15_spill] sm:$0xff]  ;;  %v4739_v28 = vld [vmem:[#allocation42_spill] sm:$0xff] }
 0x354   :  { %v1011_v22 = vpack.c.bf16 %v2408_v36, %v2412_v31  ;;  %v1809_v52 = vsel %vm800_vm1, %v1769_v11, %v3712_v54  ;;  %v4740_v31 = vld [vmem:[#allocation44_spill] sm:$0xff] }
 0x355   :  { %2110 = vmatprep.subr.bf16.mxu1 %v1809_v52  ;;  %v1377_v11 = vpack.c.bf16 %v4740_v31, %v4739_v28 }
 0x356   :  { %1286 = vmatprep.mubr.bf16.mxu0 %v1011_v22  ;;  %v2414_v14 = vpop.eup %2413  ;;  %v4742_v22 = vld [vmem:[#allocation43_spill] sm:$0xff] }
 0x357   :  { %v1753_v26 = vpop.permute.xlu0 %1752  ;;  %v2416_v46 = vpop.eup %2415 }
 0x358   :  { %v1785_v9 = vsel %vm800_vm1, %v1753_v26, %v3714_v62  ;;  %v1557_v62 = vsel %vm800_vm1, %v1506_v32, 0 }
 0x359   :  { %1287 = vmatmul.mubr.bf16.gmra.mrb[24].mxu0 %v1010_v10  ;;  %2111 = vmatpush3.bf16.msra.mxu1 %v1785_v9  ;;  %v4741_v10 = vld [vmem:[#allocation40_spill] sm:$0xff] }
 0x35a   :  { %v1378_v52 = vpack.c.bf16 %v4742_v22, %v4741_v10 }
 0x35b   :  { %v1773_v54 = vpop.permute.xlu0 %1772 }
 0x35c   :  { %v1815_v56 = vsel %vm800_vm1, %v1773_v54, %v4726_v21 }
 0x35f   :  { %v1757_v53 = vpop.permute.xlu0 %1756 }
 0x360   :  { %v1791_v57 = vsel %vm800_vm1, %v1757_v53, %v4727_v55 }
 0x363   :  { %v1777_v7 = vpop.permute.xlu0 %1776 }
 0x364   :  { %v1821_v42 = vsel %vm800_vm1, %v1777_v7, %v4732_v41 }
 0x367   :  { %v1761_v48 = vpop.permute.xlu0 %1760 }
 0x368   :  { %v1797_v58 = vsel %vm800_vm1, %v1761_v48, %v4733_v27 }
 0x36b   :  { %v1781_v35 = vpop.permute.xlu0 %1780 }
 0x36c   :  { %v1827_v36 = vsel %vm800_vm1, %v1781_v35, %v4738_v47  ;;  %v4747_v47 = vld [vmem:[#allocation5_spill] sm:$0xff] }
 0x376   :  { %v957_v38 = vpop.xlane.xlu1 %956 }
 0x377   :  { %v972_v29 = vsub.f32 %v3819_v6, %v957_v38  ;;  %v973_v17 = vsub.f32 %v3821_v8, %v957_v38 }
 0x379   :  { %v1002_v1 = vmul.f32 1.442695, %v972_v29  ;;  %v1004_v2 = vmul.f32 1.442695, %v973_v17 }
 0x37a   :  { %v1522_v39 = vpop.permute.xlu1 %1521 }
 0x37b   :  { %2417 = vpow2.f32 %v1002_v1  ;;  %2189 = vmatprep.subr.msk.bf16.mxu0 %vm800_vm1, %v1522_v39 }
 0x37c   :  { %2419 = vpow2.f32 %v1004_v2  ;;  %2101 = vmatpush3.bf16.xpose.msra.mxu0 %v1557_v62 }
 0x37e   :  { %v1771_v59 = vpop.permute.xlu1 %1770 }
 0x37f   :  { %v1812_v6 = vsel %vm800_vm1, %v1771_v59, %v4724_v0 }
 0x380   :  { %2112 = vmatprep.subr.bf16.mxu1 %v1812_v6 }
 0x382   :  { %v1755_v8 = vpop.permute.xlu1 %1754 }
 0x383   :  { %v1788_v3 = vsel %vm800_vm1, %v1755_v8, %v4725_v5 }
 0x384   :  { %2113 = vmatpush3.bf16.msra.mxu1 %v1788_v3 }
 0x385   :  { %v2418_v30 = vpop.eup %2417  ;;  %2114 = vmatprep.subr.bf16.mxu1 %v1815_v56 }
 0x386   :  { %v2420_v37 = vpop.eup %2419  ;;  %v1775_v45 = vpop.permute.xlu1 %1774  ;;  %v1012_v33 = vpack.c.bf16 %v2418_v30, %v2414_v14 }
 0x387   :  { %v1013_v43 = vpack.c.bf16 %v2420_v37, %v2416_v46  ;;  %v1818_v40 = vsel %vm800_vm1, %v1775_v45, %v4728_v44 }
 0x388   :  { %2115 = vmatpush3.bf16.msra.mxu1 %v1791_v57 }
 0x389   :  { %1294 = vmatprep.mubr.bf16.mxu0 %v1013_v43  ;;  %2116 = vmatprep.subr.bf16.mxu1 %v1818_v40 }
 0x38a   :  { %1295 = vmatmul.mubr.bf16.gmra.mrb[28].mxu0 %v1012_v33  ;;  %v1759_v63 = vpop.permute.xlu1 %1758 }
 0x38b   :  { %2102 = vmatprep.mubr.msk.bf16.mxu0 %vm800_vm1, %v1375_v51  ;;  %v1794_v50 = vsel %vm800_vm1, %v1759_v63, %v4731_v19 }
 0x38c   :  { %2117 = vmatpush3.bf16.msra.mxu1 %v1794_v50 }
 0x38d   :  { %2118 = vmatprep.subr.bf16.mxu1 %v1821_v42 }
 0x38e   :  { %v1779_v20 = vpop.permute.xlu1 %1778 }
 0x38f   :  { %v1824_v25 = vsel %vm800_vm1, %v1779_v20, %v4734_v15 }
 0x390   :  { %2119 = vmatpush3.bf16.msra.mxu1 %v1797_v58 }
 0x391   :  { %2120 = vmatprep.subr.bf16.mxu1 %v1824_v25 }
 0x392   :  { %2103 = vmatmul.mubr.msk.bf16.vlgmr.msra.gmra.mrb[32].mxu0 %vm800_vm1, %v1375_v51  ;;  %v1763_v24 = vpop.permute.xlu1 %1762 }
 0x393   :  { %2104 = vmatprep.mubr.msk.bf16.mxu0 %vm800_vm1, %v1376_v61  ;;  %v1800_v32 = vsel %vm800_vm1, %v1763_v24, %v4737_v23  ;;  %v4744_v24 = vld [vmem:[#allocation4_spill] sm:$0xff] }
 0x394   :  { %2121 = vmatpush3.bf16.msra.mxu1 %v1800_v32  ;;  %v4746_v32 = vld [vmem:[#allocation19_spill] sm:$0xff] }
 0x395   :  { %2122 = vmatprep.subr.bf16.mxu1 %v1827_v36  ;;  %v4748_v36 = vpack.c.bf16 %v4746_v32, %v4747_v47 }
 0x39a   :  { %2105 = vmatmul.mubr.msk.bf16.gmra.mrb[36].mxu0 %vm800_vm1, %v1376_v61  ;;  %v4743_v61 = vld [vmem:[#allocation3_spill] sm:$0xff] }
 0x39b   :  { %2106 = vmatprep.mubr.msk.bf16.mxu0 %vm800_vm1, %v1377_v11  ;;  %v4745_v23 = vpack.c.bf16 %v4743_v61, %v4744_v24  ;;  %v4160_v61 = vld [vmem:[%s4403_s0 + $0x70] sm:$0xff] }
 0x3a2   :  { %2107 = vmatmul.mubr.msk.bf16.gmra.mrb[40].mxu0 %vm800_vm1, %v1377_v11  ;;  %v4749_v11 = vld [vmem:[#allocation18_spill] sm:$0xff] }
 0x3a3   :  { %2108 = vmatprep.mubr.msk.bf16.mxu0 %vm800_vm1, %v1378_v52 }
 0x3aa   :  { %2109 = vmatmul.mubr.msk.bf16.gmra.mrb[44].mxu0 %vm800_vm1, %v1378_v52  ;;  %v4750_v52 = vld [vmem:[#allocation20_spill] sm:$0xff] }
 0x3ef   :  { %v2062_v26 = vpop.f32.mrb[16].mxu0 }
 0x3f0   :  { %v2063_v9 = vpop.f32.mrb[17].mxu0 }
 0x3f1   :  { %v3969_v16 = vadd.f32 %v2063_v9, %v2062_v26  ;;  %v2065_v60 = vpop.f32.mrb[18].mxu0  ;;  %v4751_v26 = vpack.c.bf16 %v4749_v11, %v4750_v52  ;;  %v4048_v9 = vld [vmem:[%s4403_s0 + $0x8] sm:$0xff] }
 0x3f2   :  { %v2066_v49 = vpop.f32.mrb[19].mxu0 }
 0x3f3   :  { %v3971_v12 = vadd.f32 %v2066_v49, %v2065_v60  ;;  %v4055_v60 = vld [vmem:[%s4403_s0] sm:$0xff]  ;;  %v4062_v49 = vld [vmem:[%s4403_s0 + $0x18] sm:$0xff] }
 0x424   :  { %v2068_v38 = vpop.f32.mrb[20].mxu0 }
 0x425   :  { %v2069_v29 = vpop.f32.mrb[21].mxu0 }
 0x426   :  { %v3973_v17 = vadd.f32 %v2069_v29, %v2068_v38  ;;  %v2071_v54 = vpop.f32.mrb[22].mxu0  ;;  %v4069_v38 = vld [vmem:[%s4403_s0 + $0x10] sm:$0xff]  ;;  %v4076_v29 = vld [vmem:[%s4403_s0 + $0x28] sm:$0xff] }
 0x427   :  { %v2072_v1 = vpop.f32.mrb[23].mxu0 }
 0x428   :  { %v3975_v2 = vadd.f32 %v2072_v1, %v2071_v54  ;;  %v4083_v54 = vld [vmem:[%s4403_s0 + $0x20] sm:$0xff]  ;;  %v4090_v1 = vld [vmem:[%s4403_s0 + $0x38] sm:$0xff] }
 0x42c   :  { %v2074_v39 = vpop.f32.mrb[24].mxu0 }
 0x42d   :  { %v2075_v62 = vpop.f32.mrb[25].mxu0 }
 0x42e   :  { %v3977_v59 = vadd.f32 %v2075_v62, %v2074_v39  ;;  %v2077_v53 = vpop.f32.mrb[26].mxu0  ;;  %v4097_v39 = vld [vmem:[%s4403_s0 + $0x30] sm:$0xff]  ;;  %v4104_v62 = vld [vmem:[%s4403_s0 + $0x48] sm:$0xff] }
 0x42f   :  { %v2078_v0 = vpop.f32.mrb[27].mxu0 }
 0x430   :  { %v3979_v6 = vadd.f32 %v2078_v0, %v2077_v53  ;;  %v1304_v53 = vmax.f32 %v3971_v12, 1e-30  ;;  %v4112_v0 = vld [vmem:[%s4403_s0 + $0x40] sm:$0xff] }
 0x432   :  { %2421 = vrcp.f32 %v1304_v53 }
 0x45d   :  { %v2080_v8 = vpop.f32.mrb[28].mxu0 }
 0x45e   :  { %v2081_v14 = vpop.f32.mrb[29].mxu0 }
 0x45f   :  { %v3981_v5 = vadd.f32 %v2081_v14, %v2080_v8  ;;  %v2083_v3 = vpop.f32.mrb[30].mxu0  ;;  %v1303_v8 = vmax.f32 %v3969_v16, 1e-30  ;;  %v4120_v14 = vld [vmem:[%s4403_s0 + $0x58] sm:$0xff] }
 0x460   :  { %v2084_v46 = vpop.f32.mrb[31].mxu0 }
 0x461   :  { %v3983_v21 = vadd.f32 %v2084_v46, %v2083_v3  ;;  %v1306_v3 = vmax.f32 %v3975_v2, 1e-30  ;;  %v4128_v46 = vld [vmem:[%s4403_s0 + $0x50] sm:$0xff]  ;;  %2423 = vrcp.f32 %v1303_v8  ;;  %v1309_v24 = vmax.f32 %v3981_v5, 1e-30 }
 0x463   :  { %2425 = vrcp.f32 %v1306_v3 }
 0x465   :  { %v3985_v56 = vpop.f32.mrb[32].mxu0 }
 0x466   :  { %v3987_v30 = vpop.f32.mrb[33].mxu0 }
 0x467   :  { %v1656_v7 = vmax.f32 %v3985_v56, %v3987_v30  ;;  %v3991_v37 = vpop.f32.mrb[34].mxu0 }
 0x468   :  { %v3993_v45 = vpop.f32.mrb[35].mxu0 }
 0x469   :  { %v1659_v33 = vmax.f32 %v3991_v37, %v3993_v45  ;;  %1657 = vmax.xlane.f32.xlu1 %v1656_v7  ;;  %v1305_v7 = vmax.f32 %v3973_v17, 1e-30 }
 0x46b   :  { %1660 = vmax.xlane.f32.xlu0 %v1659_v33  ;;  %v4136_v33 = vld [vmem:[%s4403_s0 + $0x68] sm:$0xff]  ;;  %2427 = vrcp.f32 %v1305_v7 }
 0x46d   :  { %v3997_v55 = vpop.f32.mrb[36].mxu0 }
 0x46e   :  { %v3999_v57 = vpop.f32.mrb[37].mxu0 }
 0x46f   :  { %v1662_v43 = vmax.f32 %v3997_v55, %v3999_v57  ;;  %v4003_v44 = vpop.f32.mrb[38].mxu0 }
 0x470   :  { %v4005_v40 = vpop.f32.mrb[39].mxu0 }
 0x471   :  { %v1665_v51 = vmax.f32 %v4003_v44, %v4005_v40  ;;  %1663 = vmax.xlane.f32.xlu1 %v1662_v43  ;;  %v1308_v43 = vmax.f32 %v3979_v6, 1e-30 }
 0x473   :  { %1666 = vmax.xlane.f32.xlu0 %v1665_v51  ;;  %v4144_v51 = vld [vmem:[%s4403_s0 + $0x60] sm:$0xff]  ;;  %2429 = vrcp.f32 %v1308_v43 }
 0x475   :  { %v4009_v63 = vpop.f32.mrb[40].mxu0 }
 0x476   :  { %v4011_v48 = vpop.f32.mrb[41].mxu0 }
 0x477   :  { %v1668_v19 = vmax.f32 %v4009_v63, %v4011_v48  ;;  %v4015_v50 = vpop.f32.mrb[42].mxu0 }
 0x478   :  { %v4017_v41 = vpop.f32.mrb[43].mxu0 }
 0x479   :  { %v1671_v42 = vmax.f32 %v4015_v50, %v4017_v41  ;;  %1669 = vmax.xlane.f32.xlu1 %v1668_v19  ;;  %v1307_v19 = vmax.f32 %v3977_v59, 1e-30 }
 0x47b   :  { %1672 = vmax.xlane.f32.xlu0 %v1671_v42  ;;  %v4152_v42 = vld [vmem:[%s4403_s0 + $0x78] sm:$0xff]  ;;  %2431 = vrcp.f32 %v1307_v19 }
 0x47d   :  { %v4021_v20 = vpop.f32.mrb[44].mxu0 }
 0x47e   :  { %v4023_v27 = vpop.f32.mrb[45].mxu0 }
 0x47f   :  { %v1674_v58 = vmax.f32 %v4021_v20, %v4023_v27  ;;  %v4027_v15 = vpop.f32.mrb[46].mxu0 }
 0x480   :  { %v4029_v25 = vpop.f32.mrb[47].mxu0 }
 0x481   :  { %v1677_v35 = vmax.f32 %v4027_v15, %v4029_v25  ;;  %1675 = vmax.xlane.f32.xlu1 %v1674_v58  ;;  %v1310_v58 = vmax.f32 %v3983_v21, 1e-30 }
 0x483   :  { %1678 = vmax.xlane.f32.xlu0 %v1677_v35  ;;  %v2422_v35 = vpop.eup %2421  ;;  %2433 = vrcp.f32 %v1310_v58 }
 0x484   :  { %2435 = vrcp.f32 %v1309_v24 }
 0x492   :  { %1782 = vrot.lane.b32.xlu1 %v4745_v23, %s2503_s9  ;;  %v2424_v23 = vpop.eup %2423 }
 0x493   :  { %v2426_v32 = vpop.eup %2425 }
 0x494   :  { %v2428_v47 = vpop.eup %2427 }
 0x496   :  { %1766 = vrot.lane.b32.xlu1 %v4748_v36, %s2503_s9  ;;  %v2430_v36 = vpop.eup %2429 }
 0x497   :  { %v2432_v11 = vpop.eup %2431 }
 0x498   :  { %v2434_v52 = vpop.eup %2433 }
 0x499   :  { %1764 = vrot.lane.b32.xlu0 %v4751_v26, %s2503_s9  ;;  %v2436_v26 = vpop.eup %2435 }
 0x49a   :  { %221 = vrot.lane.b32.xlu1 %v4048_v9, %s2503_s9 }
 0x49d   :  { %219 = vrot.lane.b32.xlu0 %v4055_v60, %s2503_s9 }
 0x49e   :  { %225 = vrot.lane.b32.xlu1 %v4062_v49, %s2503_s9 }
 0x4a1   :  { %223 = vrot.lane.b32.xlu0 %v4069_v38, %s2503_s9 }
 0x4a2   :  { %229 = vrot.lane.b32.xlu1 %v4076_v29, %s2503_s9 }
 0x4a5   :  { %227 = vrot.lane.b32.xlu0 %v4083_v54, %s2503_s9 }
 0x4a6   :  { %233 = vrot.lane.b32.xlu1 %v4090_v1, %s2503_s9 }
 0x4a9   :  { %231 = vrot.lane.b32.xlu0 %v4097_v39, %s2503_s9 }
 0x4aa   :  { %237 = vrot.lane.b32.xlu1 %v4104_v62, %s2503_s9 }
 0x4ad   :  { %235 = vrot.lane.b32.xlu0 %v4112_v0, %s2503_s9 }
 0x4ae   :  { %241 = vrot.lane.b32.xlu1 %v4120_v14, %s2503_s9 }
 0x4b1   :  { %239 = vrot.lane.b32.xlu0 %v4128_v46, %s2503_s9 }
 0x4b2   :  { %245 = vrot.lane.b32.xlu1 %v4136_v33, %s2503_s9 }
 0x4b5   :  { %243 = vrot.lane.b32.xlu0 %v4144_v51, %s2503_s9 }
 0x4b6   :  { %249 = vrot.lane.b32.xlu1 %v4152_v42, %s2503_s9 }
 0x4b9   :  { %247 = vrot.lane.b32.xlu0 %v4160_v61, %s2503_s9 }
 0x4ba   :  { %1329 = vrot.lane.b32.xlu1 %v2422_v35, %s2502_s2 }
 0x4bd   :  { %1327 = vrot.lane.b32.xlu0 %v2424_v23, %s2502_s2 }
 0x4be   :  { %1333 = vrot.lane.b32.xlu1 %v2426_v32, %s2502_s2 }
 0x4c1   :  { %1331 = vrot.lane.b32.xlu0 %v2428_v47, %s2502_s2 }
 0x4c2   :  { %1337 = vrot.lane.b32.xlu1 %v2430_v36, %s2502_s2 }
 0x4c5   :  { %1335 = vrot.lane.b32.xlu0 %v2432_v11, %s2502_s2 }
 0x4c6   :  { %1341 = vrot.lane.b32.xlu1 %v2434_v52, %s2502_s2 }
 0x4c9   :  { %1339 = vrot.lane.b32.xlu0 %v2436_v26, %s2502_s2 }
 0x4f6   :  { %v1658_v53 = vpop.xlane.xlu1 %1657 }
 0x4f7   :  { %v1680_v8 = vsub.f32 %v3985_v56, %v1658_v53  ;;  %v1681_v3 = vsub.f32 %v3987_v30, %v1658_v53 }
 0x4f8   :  { %v1661_v7 = vpop.xlane.xlu0 %1660 }
 0x4f9   :  { %v1696_v43 = vmul.f32 1.442695, %v1680_v8  ;;  %v1682_v19 = vsub.f32 %v3991_v37, %v1661_v7  ;;  %v1683_v58 = vsub.f32 %v3993_v45, %v1661_v7  ;;  %v1698_v35 = vmul.f32 1.442695, %v1681_v3 }
 0x4fb   :  { %v1700_v24 = vmul.f32 1.442695, %v1682_v19  ;;  %v1702_v23 = vmul.f32 1.442695, %v1683_v58  ;;  %2437 = vpow2.f32 %v1696_v43 }
 0x4fd   :  { %2439 = vpow2.f32 %v1700_v24 }
 0x4fe   :  { %2441 = vpow2.f32 %v1702_v23  ;;  %v1664_v32 = vpop.xlane.xlu1 %1663 }
 0x4ff   :  { %2443 = vpow2.f32 %v1698_v35  ;;  %v1684_v47 = vsub.f32 %v3997_v55, %v1664_v32  ;;  %v1685_v56 = vsub.f32 %v3999_v57, %v1664_v32 }
 0x500   :  { %v1667_v36 = vpop.xlane.xlu0 %1666 }
 0x501   :  { %v1704_v30 = vmul.f32 1.442695, %v1684_v47  ;;  %v1686_v11 = vsub.f32 %v4003_v44, %v1667_v36  ;;  %v1687_v37 = vsub.f32 %v4005_v40, %v1667_v36  ;;  %v1706_v52 = vmul.f32 1.442695, %v1685_v56 }
 0x503   :  { %v1708_v45 = vmul.f32 1.442695, %v1686_v11  ;;  %v1710_v26 = vmul.f32 1.442695, %v1687_v37  ;;  %2445 = vpow2.f32 %v1704_v30 }
 0x505   :  { %2447 = vpow2.f32 %v1708_v45  ;;  %v4181_v53 = vpop.eup %2437 }
 0x506   :  { %2449 = vpow2.f32 %v1710_v26  ;;  %v1670_v8 = vpop.xlane.xlu1 %1669 }
 0x507   :  { %v4183_v3 = vpop.eup %2439  ;;  %2451 = vpow2.f32 %v1706_v52  ;;  %v1688_v55 = vsub.f32 %v4009_v63, %v1670_v8  ;;  %v1689_v57 = vsub.f32 %v4011_v48, %v1670_v8 }
 0x508   :  { %v2442_v7 = vpop.eup %2441  ;;  %v1673_v44 = vpop.xlane.xlu0 %1672  ;;  %v1728_v40 = vpack.c.bf16 %v4183_v3, %v4181_v53 }
 0x509   :  { %v2444_v43 = vpop.eup %2443  ;;  %v1712_v19 = vmul.f32 1.442695, %v1688_v55  ;;  %v1714_v58 = vmul.f32 1.442695, %v1689_v57  ;;  %v1690_v35 = vsub.f32 %v4015_v50, %v1673_v44  ;;  %v1691_v24 = vsub.f32 %v4017_v41, %v1673_v44 }
 0x50a   :  { %v1729_v23 = vpack.c.bf16 %v2442_v7, %v2444_v43 }
 0x50b   :  { %2453 = vpow2.f32 %v1712_v19  ;;  %v1716_v32 = vmul.f32 1.442695, %v1690_v35  ;;  %v1718_v47 = vmul.f32 1.442695, %v1691_v24 }
 0x50c   :  { %2455 = vpow2.f32 %v1714_v58  ;;  %1864 = vmatprep.mubr.bf16.mxu1 %v1729_v23  ;;  %v4753_v58 = vld [vmem:[#allocation17_spill] sm:$0xff] }
 0x50d   :  { %2457 = vpow2.f32 %v1716_v32  ;;  %v4191_v63 = vpop.eup %2445  ;;  %v4754_v32 = vld [vmem:[#allocation25_spill] sm:$0xff] }
 0x50e   :  { %2459 = vpow2.f32 %v1718_v47  ;;  %v1676_v48 = vpop.xlane.xlu1 %1675 }
 0x50f   :  { %v2448_v56 = vpop.eup %2447  ;;  %v1692_v36 = vsub.f32 %v4021_v20, %v1676_v48  ;;  %v1693_v30 = vsub.f32 %v4023_v27, %v1676_v48  ;;  %v4752_v27 = vld [vmem:[#allocation16_spill] sm:$0xff] }
 0x510   :  { %v2450_v11 = vpop.eup %2449  ;;  %v1679_v50 = vpop.xlane.xlu0 %1678  ;;  %v1730_v41 = vpack.c.bf16 %v2448_v56, %v4191_v63  ;;  %v4755_v63 = vld [vmem:[#allocation21_spill] sm:$0xff] }
 0x511   :  { %v2452_v37 = vpop.eup %2451  ;;  %v1720_v52 = vmul.f32 1.442695, %v1692_v36  ;;  %v1722_v45 = vmul.f32 1.442695, %v1693_v30  ;;  %v1694_v26 = vsub.f32 %v4027_v15, %v1679_v50  ;;  %v1695_v53 = vsub.f32 %v4029_v25, %v1679_v50  ;;  %v4756_v30 = vld [vmem:[#allocation23_spill] sm:$0xff] }
 0x512   :  { %v1783_v8 = vpop.permute.xlu1 %1782  ;;  %v1731_v3 = vpack.c.bf16 %v2450_v11, %v2452_v37 }
 0x513   :  { %2461 = vpow2.f32 %v1720_v52  ;;  %v1724_v55 = vmul.f32 1.442695, %v1694_v26  ;;  %v1726_v57 = vmul.f32 1.442695, %v1695_v53  ;;  %v1830_v15 = vsel %vm800_vm1, %v1783_v8, %v4753_v58  ;;  %v4757_v52 = vld [vmem:[#allocation24_spill] sm:$0xff] }
 0x514   :  { %2463 = vpow2.f32 %v1722_v45  ;;  %v1765_v20 = vpop.permute.xlu0 %1764 }
 0x515   :  { %v2454_v7 = vpop.eup %2453  ;;  %2465 = vpow2.f32 %v1724_v55  ;;  %v1803_v44 = vsel %vm800_vm1, %v1765_v20, %v4752_v27  ;;  %v4758_v55 = vld [vmem:[#allocation22_spill] sm:$0xff] }
 0x516   :  { %v2456_v43 = vpop.eup %2455  ;;  %2467 = vpow2.f32 %v1726_v57  ;;  %2123 = vmatpush3.bf16.msra.mxu1 %v1803_v44  ;;  %v1767_v19 = vpop.permute.xlu1 %1766  ;;  %v4759_v44 = vld [vmem:[#allocation27_spill] sm:$0xff] }
 0x517   :  { %v2458_v25 = vpop.eup %2457  ;;  %2124 = vmatprep.subr.bf16.mxu1 %v1830_v15  ;;  %v1806_v47 = vsel %vm800_vm1, %v1767_v19, %v4754_v32  ;;  %v4762_v32 = vld [vmem:[#allocation28_spill] sm:$0xff] }
 0x518   :  { %v2460_v35 = vpop.eup %2459  ;;  %v220_v24 = vpop.permute.xlu0 %219  ;;  %v1732_v23 = vpack.c.bf16 %v2458_v25, %v2454_v7  ;;  %v4761_v25 = vld [vmem:[#allocation26_spill] sm:$0xff] }
 0x519   :  { %v267_v48 = vadd.f32 %v220_v24, %v4755_v63  ;;  %v1733_v56 = vpack.c.bf16 %v2460_v35, %v2456_v43 }
 0x51a   :  { %2125 = vmatpush3.bf16.msra.mxu1 %v1806_v47  ;;  %v222_v36 = vpop.permute.xlu1 %221 }
 0x51b   :  { %v268_v11 = vadd.f32 %v222_v36, %v4756_v30  ;;  %299 = vrot.lane.b32.xlu0 %v267_v48, %s2503_s9 }
 0x51c   :  { %v224_v50 = vpop.permute.xlu0 %223 }
 0x51d   :  { %v2462_v37 = vpop.eup %2461  ;;  %v269_v45 = vadd.f32 %v224_v50, %v4757_v52  ;;  %1865 = vmatmul.mubr.bf16.vlgmr.msra.gmra.mrb[16].mxu1 %v1728_v40  ;;  %301 = vrot.lane.b32.xlu1 %v268_v11, %s2503_s9  ;;  %v4760_v40 = vld [vmem:[#allocation29_spill] sm:$0xff] }
 0x51e   :  { %v2464_v26 = vpop.eup %2463  ;;  %1872 = vmatprep.mubr.bf16.mxu1 %v1731_v3  ;;  %v226_v53 = vpop.permute.xlu1 %225 }
 0x51f   :  { %v2466_v8 = vpop.eup %2465  ;;  %v270_v57 = vadd.f32 %v226_v53, %v4758_v55  ;;  %303 = vrot.lane.b32.xlu0 %v269_v45, %s2503_s9 }
 0x520   :  { %v2468_v20 = vpop.eup %2467  ;;  %v228_v7 = vpop.permute.xlu0 %227  ;;  %v1734_v27 = vpack.c.bf16 %v2466_v8, %v2462_v37 }
 0x521   :  { %v271_v43 = vadd.f32 %v228_v7, %v4759_v44  ;;  %305 = vrot.lane.b32.xlu1 %v270_v57, %s2503_s9  ;;  %v1735_v19 = vpack.c.bf16 %v2468_v20, %v2464_v26 }
 0x522   :  { %v230_v58 = vpop.permute.xlu1 %229 }
 0x523   :  { %v272_v15 = vadd.f32 %v230_v58, %v4760_v40  ;;  %307 = vrot.lane.b32.xlu0 %v271_v43, %s2503_s9 }
 0x524   :  { %v232_v3 = vpop.permute.xlu0 %231 }
 0x525   :  { %v273_v35 = vadd.f32 %v232_v3, %v4761_v25  ;;  %1873 = vmatmul.mubr.bf16.gmra.mrb[20].mxu1 %v1730_v41  ;;  %309 = vrot.lane.b32.xlu1 %v272_v15, %s2503_s9 }
 0x526   :  { %1880 = vmatprep.mubr.bf16.mxu1 %v1733_v56  ;;  %v234_v24 = vpop.permute.xlu1 %233 }
 0x527   :  { %v274_v47 = vadd.f32 %v234_v24, %v4762_v32  ;;  %311 = vrot.lane.b32.xlu0 %v273_v35, %s2503_s9 }
 0x528   :  { %v236_v63 = vpop.permute.xlu0 %235 }
 0x529   :  { %v275_v48 = vadd.f32 %v236_v63, %v4729_v18  ;;  %313 = vrot.lane.b32.xlu1 %v274_v47, %s2503_s9 }
 0x52a   :  { %v238_v36 = vpop.permute.xlu1 %237 }
 0x52b   :  { %v276_v30 = vadd.f32 %v238_v36, %v4730_v4  ;;  %315 = vrot.lane.b32.xlu0 %v275_v48, %s2503_s9 }
 0x52c   :  { %v240_v11 = vpop.permute.xlu0 %239 }
 0x52d   :  { %v277_v41 = vadd.f32 %v240_v11, %v4735_v34  ;;  %1881 = vmatmul.mubr.bf16.gmra.mrb[24].mxu1 %v1732_v23  ;;  %317 = vrot.lane.b32.xlu1 %v276_v30, %s2503_s9 }
 0x52e   :  { %1888 = vmatprep.mubr.bf16.mxu1 %v1735_v19  ;;  %v242_v56 = vpop.permute.xlu1 %241 }
 0x52f   :  { %v278_v50 = vadd.f32 %v242_v56, %v4736_v13  ;;  %319 = vrot.lane.b32.xlu0 %v277_v41, %s2503_s9 }
 0x530   :  { %v244_v18 = vpop.permute.xlu0 %243 }
 0x531   :  { %v279_v37 = vadd.f32 %v244_v18, %v4739_v28  ;;  %321 = vrot.lane.b32.xlu1 %v278_v50, %s2503_s9 }
 0x532   :  { %v246_v4 = vpop.permute.xlu1 %245 }
 0x533   :  { %v280_v52 = vadd.f32 %v246_v4, %v4740_v31  ;;  %323 = vrot.lane.b32.xlu0 %v279_v37, %s2503_s9 }
 0x534   :  { %v4232_v34 = vpop.permute.xlu0 %247 }
 0x535   :  { %1889 = vmatmul.mubr.bf16.gmra.mrb[28].mxu1 %v1734_v27  ;;  %325 = vrot.lane.b32.xlu1 %v280_v52, %s2503_s9 }
 0x536   :  { %v4234_v23 = vpop.permute.xlu1 %249 }
 0x538   :  { %v1328_v13 = vpop.permute.xlu0 %1327 }
 0x539   :  { %v1351_v55 = vmul.f32 %v3969_v16, %v1328_v13 }
 0x53a   :  { %v1330_v45 = vpop.permute.xlu1 %1329 }
 0x53b   :  { %v1352_v31 = vmul.f32 %v3971_v12, %v1330_v45  ;;  %v1359_v7 = vadd.f32 %v4055_v60, %v1351_v55 }
 0x53c   :  { %v1332_v26 = vpop.permute.xlu0 %1331 }
 0x53d   :  { %v1353_v27 = vmul.f32 %v3973_v17, %v1332_v26  ;;  %v1360_v43 = vadd.f32 %v4048_v9, %v1352_v31 }
 0x53e   :  { %v1334_v53 = vpop.permute.xlu1 %1333 }
 0x53f   :  { %v1354_v19 = vmul.f32 %v3975_v2, %v1334_v53  ;;  %v1361_v12 = vadd.f32 %v4069_v38, %v1353_v27 }
 0x540   :  { %v1336_v8 = vpop.permute.xlu0 %1335 }
 0x541   :  { %v1355_v17 = vmul.f32 %v3977_v59, %v1336_v8  ;;  %v1362_v9 = vadd.f32 %v4062_v49, %v1354_v19 }
 0x542   :  { %v1338_v28 = vpop.permute.xlu1 %1337 }
 0x543   :  { %v1356_v60 = vmul.f32 %v3979_v6, %v1338_v28  ;;  %v1363_v38 = vadd.f32 %v4083_v54, %v1355_v17 }
 0x544   :  { %v1340_v57 = vpop.permute.xlu0 %1339 }
 0x545   :  { %v1357_v58 = vmul.f32 %v3981_v5, %v1340_v57  ;;  %v1364_v49 = vadd.f32 %v4076_v29, %v1356_v60 }
 0x546   :  { %v1342_v20 = vpop.permute.xlu1 %1341 }
 0x547   :  { %v1358_v40 = vmul.f32 %v3983_v21, %v1342_v20  ;;  %v1365_v54 = vadd.f32 %v4097_v39, %v1357_v58 }
 0x549   :  { %v1366_v21 = vadd.f32 %v4090_v1, %v1358_v40  ;;  %v281_v40 = vadd.f32 %v4232_v34, %v4741_v10 }
 0x58d   :  { %v300_v44 = vpop.permute.xlu0 %299 }
 0x58e   :  { %348 = vst.msk [vmem:[%s4406_s4] sm:$0xff] %vm347_vm2, %v300_v44 }
 0x58f   :  { %1367 = vst.msk [vmem:[%s4406_s4] sm:$0xff] %vm800_vm1, %v1359_v7  ;;  %v302_v16 = vpop.permute.xlu1 %301 }
 0x590   :  { %349 = vst.msk [vmem:[%s4406_s4 + $0x8] sm:$0xff] %vm347_vm2, %v302_v16 }
 0x591   :  { %1368 = vst.msk [vmem:[%s4406_s4 + $0x8] sm:$0xff] %vm800_vm1, %v1360_v43  ;;  %v304_v2 = vpop.permute.xlu0 %303 }
 0x592   :  { %350 = vst.msk [vmem:[%s4406_s4 + $0x10] sm:$0xff] %vm347_vm2, %v304_v2 }
 0x593   :  { %1369 = vst.msk [vmem:[%s4406_s4 + $0x10] sm:$0xff] %vm800_vm1, %v1361_v12  ;;  %v306_v59 = vpop.permute.xlu1 %305 }
 0x594   :  { %351 = vst.msk [vmem:[%s4406_s4 + $0x18] sm:$0xff] %vm347_vm2, %v306_v59 }
 0x595   :  { %1370 = vst.msk [vmem:[%s4406_s4 + $0x18] sm:$0xff] %vm800_vm1, %v1362_v9  ;;  %v308_v6 = vpop.permute.xlu0 %307 }
 0x596   :  { %352 = vst.msk [vmem:[%s4406_s4 + $0x20] sm:$0xff] %vm347_vm2, %v308_v6 }
 0x597   :  { %1371 = vst.msk [vmem:[%s4406_s4 + $0x20] sm:$0xff] %vm800_vm1, %v1363_v38  ;;  %v310_v5 = vpop.permute.xlu1 %309 }
 0x598   :  { %353 = vst.msk [vmem:[%s4406_s4 + $0x28] sm:$0xff] %vm347_vm2, %v310_v5  ;;  %v282_v5 = vadd.f32 %v4234_v23, %v4742_v22 }
 0x599   :  { %1372 = vst.msk [vmem:[%s4406_s4 + $0x28] sm:$0xff] %vm800_vm1, %v1364_v49  ;;  %v312_v29 = vpop.permute.xlu0 %311 }
 0x59a   :  { %354 = vst.msk [vmem:[%s4406_s4 + $0x30] sm:$0xff] %vm347_vm2, %v312_v29 }
 0x59b   :  { %1373 = vst.msk [vmem:[%s4406_s4 + $0x30] sm:$0xff] %vm800_vm1, %v1365_v54  ;;  %v314_v15 = vpop.permute.xlu1 %313 }
 0x59c   :  { %355 = vst.msk [vmem:[%s4406_s4 + $0x38] sm:$0xff] %vm347_vm2, %v314_v15 }
 0x59d   :  { %1374 = vst.msk [vmem:[%s4406_s4 + $0x38] sm:$0xff] %vm800_vm1, %v1366_v21  ;;  %v316_v39 = vpop.permute.xlu0 %315 }
 0x59e   :  { %356 = vst.msk [vmem:[%s4406_s4 + $0x40] sm:$0xff] %vm347_vm2, %v316_v39 }
 0x59f   :  { %v318_v1 = vpop.permute.xlu1 %317 }
 0x5a0   :  { %357 = vst.msk [vmem:[%s4406_s4 + $0x48] sm:$0xff] %vm347_vm2, %v318_v1 }
 0x5a1   :  { %v320_v3 = vpop.permute.xlu0 %319 }
 0x5a2   :  { %358 = vst.msk [vmem:[%s4406_s4 + $0x50] sm:$0xff] %vm347_vm2, %v320_v3 }
 0x5a3   :  { %v322_v25 = vpop.permute.xlu1 %321 }
 0x5a4   :  { %359 = vst.msk [vmem:[%s4406_s4 + $0x58] sm:$0xff] %vm347_vm2, %v322_v25 }
 0x5a5   :  { %v324_v35 = vpop.permute.xlu0 %323 }
 0x5a6   :  { %360 = vst.msk [vmem:[%s4406_s4 + $0x60] sm:$0xff] %vm347_vm2, %v324_v35 }
 0x5a7   :  { %v326_v24 = vpop.permute.xlu1 %325 }
 0x5a8   :  { %361 = vst.msk [vmem:[%s4406_s4 + $0x68] sm:$0xff] %vm347_vm2, %v326_v24 }
 0x5f0   :  { %v2126_v32 = vpop.f32.mrb[16].mxu1 }
 0x5f1   :  { %v2127_v47 = vpop.f32.mrb[17].mxu1 }
 0x5f2   :  { %v2128_v63 = vadd.f32 %v2127_v47, %v2126_v32  ;;  %v2129_v48 = vpop.f32.mrb[18].mxu1 }
 0x5f3   :  { %v2130_v36 = vpop.f32.mrb[19].mxu1 }
 0x5f4   :  { %v1897_v30 = vmax.f32 %v2128_v63, 1e-30  ;;  %v2131_v11 = vadd.f32 %v2130_v36, %v2129_v48 }
 0x5f6   :  { %2469 = vrcp.f32 %v1897_v30  ;;  %v1898_v41 = vmax.f32 %v2131_v11, 1e-30 }
 0x5f8   :  { %2471 = vrcp.f32 %v1898_v41  ;;  %v2132_v56 = vpop.f32.mrb[20].mxu1 }
 0x5f9   :  { %v2133_v50 = vpop.f32.mrb[21].mxu1 }
 0x5fa   :  { %v2134_v18 = vadd.f32 %v2133_v50, %v2132_v56  ;;  %v2135_v37 = vpop.f32.mrb[22].mxu1 }
 0x5fb   :  { %v2136_v4 = vpop.f32.mrb[23].mxu1 }
 0x5fc   :  { %v1899_v52 = vmax.f32 %v2134_v18, 1e-30  ;;  %v2137_v13 = vadd.f32 %v2136_v4, %v2135_v37 }
 0x5fe   :  { %2473 = vrcp.f32 %v1899_v52  ;;  %v1900_v45 = vmax.f32 %v2137_v13, 1e-30 }
 0x600   :  { %v2470_v26 = vpop.eup %2469  ;;  %2475 = vrcp.f32 %v1900_v45  ;;  %v2138_v53 = vpop.f32.mrb[24].mxu1 }
 0x601   :  { %v2139_v8 = vpop.f32.mrb[25].mxu1  ;;  %1921 = vrot.lane.b32.xlu0 %v2470_v26, %s2502_s2 }
 0x602   :  { %v2472_v28 = vpop.eup %2471  ;;  %v2140_v55 = vadd.f32 %v2139_v8, %v2138_v53  ;;  %v2141_v57 = vpop.f32.mrb[26].mxu1 }
 0x603   :  { %v2142_v31 = vpop.f32.mrb[27].mxu1  ;;  %1923 = vrot.lane.b32.xlu1 %v2472_v28, %s2502_s2 }
 0x604   :  { %v1901_v20 = vmax.f32 %v2140_v55, 1e-30  ;;  %v2143_v7 = vadd.f32 %v2142_v31, %v2141_v57 }
 0x606   :  { %2477 = vrcp.f32 %v1901_v20  ;;  %v1902_v27 = vmax.f32 %v2143_v7, 1e-30 }
 0x608   :  { %v2474_v44 = vpop.eup %2473  ;;  %2479 = vrcp.f32 %v1902_v27  ;;  %v2144_v43 = vpop.f32.mrb[28].mxu1 }
 0x609   :  { %v2145_v19 = vpop.f32.mrb[29].mxu1  ;;  %1925 = vrot.lane.b32.xlu0 %v2474_v44, %s2502_s2 }
 0x60a   :  { %v2476_v16 = vpop.eup %2475  ;;  %v2146_v12 = vadd.f32 %v2145_v19, %v2144_v43  ;;  %v2147_v17 = vpop.f32.mrb[30].mxu1 }
 0x60b   :  { %v2148_v2 = vpop.f32.mrb[31].mxu1  ;;  %1927 = vrot.lane.b32.xlu1 %v2476_v16, %s2502_s2 }
 0x60c   :  { %v1903_v9 = vmax.f32 %v2146_v12, 1e-30  ;;  %v2149_v60 = vadd.f32 %v2148_v2, %v2147_v17 }
 0x60e   :  { %2481 = vrcp.f32 %v1903_v9  ;;  %v1904_v59 = vmax.f32 %v2149_v60, 1e-30 }
 0x610   :  { %v2478_v38 = vpop.eup %2477  ;;  %2483 = vrcp.f32 %v1904_v59 }
 0x611   :  { %1929 = vrot.lane.b32.xlu0 %v2478_v38, %s2502_s2 }
 0x612   :  { %v2480_v58 = vpop.eup %2479 }
 0x613   :  { %1931 = vrot.lane.b32.xlu1 %v2480_v58, %s2502_s2 }
 0x618   :  { %v2482_v6 = vpop.eup %2481 }
 0x619   :  { %1933 = vrot.lane.b32.xlu0 %v2482_v6, %s2502_s2 }
 0x61a   :  { %v2484_v49 = vpop.eup %2483 }
 0x61b   :  { %1935 = vrot.lane.b32.xlu1 %v2484_v49, %s2502_s2 }
 0x61d   :  { %327 = vrot.lane.b32.xlu0 %v281_v40, %s2503_s9 }
 0x61f   :  { %329 = vrot.lane.b32.xlu1 %v282_v5, %s2503_s9 }
 0x673   :  { %v1922_v54 = vpop.permute.xlu0 %1921 }
 0x674   :  { %v1945_v29 = vmul.f32 %v2128_v63, %v1922_v54 }
 0x675   :  { %v1924_v21 = vpop.permute.xlu1 %1923 }
 0x676   :  { %v1953_v15 = vadd.f32 %v4112_v0, %v1945_v29  ;;  %v1946_v39 = vmul.f32 %v2131_v11, %v1924_v21 }
 0x678   :  { %1961 = vst.msk [vmem:[%s4406_s4 + $0x40] sm:$0xff] %vm800_vm1, %v1953_v15  ;;  %v1954_v10 = vadd.f32 %v4104_v62, %v1946_v39 }
 0x67a   :  { %1962 = vst.msk [vmem:[%s4406_s4 + $0x48] sm:$0xff] %vm800_vm1, %v1954_v10 }
 0x67b   :  { %v1926_v22 = vpop.permute.xlu0 %1925 }
 0x67c   :  { %v1947_v34 = vmul.f32 %v2134_v18, %v1926_v22 }
 0x67d   :  { %v1928_v23 = vpop.permute.xlu1 %1927 }
 0x67e   :  { %v1955_v1 = vadd.f32 %v4128_v46, %v1947_v34  ;;  %v1948_v3 = vmul.f32 %v2137_v13, %v1928_v23 }
 0x680   :  { %1963 = vst.msk [vmem:[%s4406_s4 + $0x50] sm:$0xff] %vm800_vm1, %v1955_v1  ;;  %v1956_v0 = vadd.f32 %v4120_v14, %v1948_v3 }
 0x682   :  { %1964 = vst.msk [vmem:[%s4406_s4 + $0x58] sm:$0xff] %vm800_vm1, %v1956_v0 }
 0x683   :  { %v1930_v62 = vpop.permute.xlu0 %1929 }
 0x684   :  { %v1949_v25 = vmul.f32 %v2140_v55, %v1930_v62 }
 0x685   :  { %v1932_v35 = vpop.permute.xlu1 %1931 }
 0x686   :  { %v1957_v24 = vadd.f32 %v4144_v51, %v1949_v25  ;;  %v1950_v32 = vmul.f32 %v2143_v7, %v1932_v35 }
 0x688   :  { %1965 = vst.msk [vmem:[%s4406_s4 + $0x60] sm:$0xff] %vm800_vm1, %v1957_v24  ;;  %v1958_v46 = vadd.f32 %v4136_v33, %v1950_v32 }
 0x68a   :  { %1966 = vst.msk [vmem:[%s4406_s4 + $0x68] sm:$0xff] %vm800_vm1, %v1958_v46 }
 0x68b   :  { %v1934_v14 = vpop.permute.xlu0 %1933 }
 0x68c   :  { %v1951_v47 = vmul.f32 %v2146_v12, %v1934_v14 }
 0x68d   :  { %v1936_v63 = vpop.permute.xlu1 %1935 }
 0x68e   :  { %v1959_v48 = vadd.f32 %v4160_v61, %v1951_v47  ;;  %v1952_v36 = vmul.f32 %v2149_v60, %v1936_v63 }
 0x68f   :  { %v328_v51 = vpop.permute.xlu0 %327 }
 0x690   :  { %v1960_v30 = vadd.f32 %v4152_v42, %v1952_v36  ;;  %362 = vst.msk [vmem:[%s4406_s4 + $0x70] sm:$0xff] %vm347_vm2, %v328_v51 }
 0x691   :  { %1967 = vst.msk [vmem:[%s4406_s4 + $0x70] sm:$0xff] %vm800_vm1, %v1959_v48  ;;  %v330_v33 = vpop.permute.xlu1 %329 }
 0x692   :  { %363 = vst.msk [vmem:[%s4406_s4 + $0x78] sm:$0xff] %vm347_vm2, %v330_v33 }
 0x693   :  { %1968 = vst.msk [vmem:[%s4406_s4 + $0x78] sm:$0xff] %vm800_vm1, %v1960_v30 }

</bundles_post_ra>
